<compile_context>
chip_gen: v6e
topology: v6e:2x2x1
jax: 0.10.0
libtpu: 0.0.40
codegen_flags: <defaults>
</compile_context>

<pallas_src>
import functools

import jax
import jax.numpy as jnp
from jax.experimental import pallas as pl
from jax.experimental.pallas import tpu as pltpu


NUM_PARTIALS = 2          # one partial result per TensorCore (v7x has 2 TCs)
LANE_UNIT = 1024          # 8 sublanes * 128 lanes -> one f32 vreg per channel
MAX_TILE_CELLS = 4096     # (30, 32, 128) f32 ~= 0.49 MiB per input per step


def _cdiv(a, b):
    return (a + b - 1) // b


def _iou(ax, ay, aw, ah, bx, by, bw, bh):
    """IoU exactly as YOLOLoss.selectBox: union = A1 + A2, iou = inter/(union-inter).
    The divide is done with an approx reciprocal on the EUP (free slot here)."""
    a_x1 = jnp.clip(ax - aw * 0.5, 0.0, 448.0)
    a_y1 = jnp.clip(ay - ah * 0.5, 0.0, 448.0)
    a_x2 = jnp.clip(ax + aw * 0.5, 0.0, 448.0)
    a_y2 = jnp.clip(ay + ah * 0.5, 0.0, 448.0)
    b_x1 = jnp.clip(bx - bw * 0.5, 0.0, 448.0)
    b_y1 = jnp.clip(by - bh * 0.5, 0.0, 448.0)
    b_x2 = jnp.clip(bx + bw * 0.5, 0.0, 448.0)
    b_y2 = jnp.clip(by + bh * 0.5, 0.0, 448.0)

    w = jnp.maximum(jnp.minimum(a_x2, b_x2) - jnp.maximum(a_x1, b_x1), 1e-6)
    h = jnp.maximum(jnp.minimum(a_y2, b_y2) - jnp.maximum(a_y1, b_y1), 1e-6)
    inter = w * h
    union = (a_x2 - a_x1) * (a_y2 - a_y1) + (b_x2 - b_x1) * (b_y2 - b_y1)
    # Matches the torch reference: denominator can be ~0 for degenerate boxes;
    # those lanes are no-object lanes and are selected away downstream.
    return inter * pl.reciprocal(union - inter, approx=True)


def _yolo_loss_kernel(x_ref, t_ref, off_ref, out_ref, *, cell,
                      lambda_coord, lambda_noobj):
    step = pl.program_id(1)

    @pl.when(step == 0)
    def _init():
        out_ref[...] = jnp.zeros_like(out_ref)

    col_off = off_ref[0]                 # (TR,128) horizontal (column) offsets
    row_off = off_ref[1]                 # (TR,128) vertical (row) offsets

    def X(c):                            # prediction channel c -> dense (TR,128)
        return x_ref[c]

    def T(c):                            # target channel c -> dense (TR,128)
        return t_ref[c]

    # ---- selectBox: absolute-coordinate boxes & IoUs for both predicted boxes
    iou1 = _iou(X(0) * cell + col_off, X(1) * cell + row_off,
                X(2) * 448.0, X(3) * 448.0,
                T(0) * cell + col_off, T(1) * cell + row_off,
                T(2) * 448.0, T(3) * 448.0)
    iou2 = _iou(X(5) * cell + col_off, X(6) * cell + row_off,
                X(7) * 448.0, X(8) * 448.0,
                T(5) * cell + col_off, T(6) * cell + row_off,
                T(7) * 448.0, T(8) * 448.0)
    m = iou1 < iou2                      # responsible box is box 2 where True
    iou_sel = jnp.where(m, iou2, iou1)
    hasobj = T(4) > 0.0

    # ---- forward: clamp predicted w/h and pick the responsible box ----------
    w1 = jnp.clip(X(2), 1e-6, 1e6)
    h1 = jnp.clip(X(3), 1e-6, 1e6)
    w2 = jnp.clip(X(7), 1e-6, 1e6)
    h2 = jnp.clip(X(8), 1e-6, 1e6)

    si_x = jnp.where(m, X(5), X(0))
    si_y = jnp.where(m, X(6), X(1))
    si_w = jnp.where(m, w2, w1)
    si_h = jnp.where(m, h2, h1)
    si_c = jnp.where(m, X(9), X(4))

    st_x = T(0)
    st_y = T(1)
    # sqrt only evaluated on hasObj rows in torch; guard padded/no-object lanes.
    st_w = jnp.where(hasobj, T(2), 1.0)
    st_h = jnp.where(hasobj, T(3), 1.0)

    # ---- fused per-cell error (class channels reduced with plain VPU adds) --
    cls = (X(10) - T(10)) ** 2
    for c in range(11, 30):
        cls = cls + (X(c) - T(c)) ** 2

    d_sw = jnp.sqrt(si_w) - jnp.sqrt(st_w)
    d_sh = jnp.sqrt(si_h) - jnp.sqrt(st_h)
    obj_err = (lambda_coord * ((si_x - st_x) ** 2 + (si_y - st_y) ** 2
                               + d_sw * d_sw + d_sh * d_sh)
               + (si_c - iou_sel) ** 2
               + cls)
    noobj_err = lambda_noobj * (X(4) ** 2 + X(9) ** 2)
    per_cell = jnp.where(hasobj, obj_err, noobj_err)        # (TR, 128)

    # Fold sublane groups into one (8,128) tile and accumulate into the
    # resident output block; the final tiny reduce + /bs happens in the wrapper.
    tr = per_cell.shape[0]
    folded = per_cell[0:8, :]
    for k in range(1, tr // 8):
        folded = folded + per_cell[8 * k:8 * (k + 1), :]
    out_ref[...] += folded


def yolo_loss(input_nchw, target, *, lambda_coord, lambda_noobj, grid=7):
    """input_nchw: (bs, 30, G, G) conv output (NCHW);
       target:     (bs, G, G, 30) (anything flattening to (bs*G*G, 30) in
                   batch, row, column order)."""
    bs = input_nchw.shape[0]
    g2 = grid * grid
    n = bs * g2
    cell = 448.0 / grid

    # Prediction is already channel-major (NCHW): one transpose to (30, N),
    # no NCHW->NHWC permute pass.
    x = jnp.swapaxes(input_nchw.astype(jnp.float32).reshape(bs, 30, g2),
                     0, 1).reshape(30, n)
    t = jnp.moveaxis(target.astype(jnp.float32).reshape(bs, g2, 30),
                     -1, 0).reshape(30, n)

    # Precomputed per-cell grid offsets (no int div/mod by G inside the kernel).
    lin = jnp.arange(grid, dtype=jnp.float32) * cell
    col = jnp.tile(lin[None, None, :], (bs, grid, 1)).reshape(1, n)
    row = jnp.tile(lin[None, :, None], (bs, 1, grid)).reshape(1, n)
    off = jnp.concatenate([col, row], axis=0)                     # (2, N)

    # Tile the cell axis: pad to whole (8,128)-dense tiles and to a whole
    # number of tiles per partial (zero padding is loss-neutral).
    tile_cells = min(MAX_TILE_CELLS, _cdiv(n, LANE_UNIT) * LANE_UNIT)
    num_tiles = _cdiv(n, tile_cells)
    num_tiles = _cdiv(num_tiles, NUM_PARTIALS) * NUM_PARTIALS
    n_pad = num_tiles * tile_cells
    pad = n_pad - n
    r_total = n_pad // 128
    tr = tile_cells // 128
    tiles_per_partial = num_tiles // NUM_PARTIALS

    x = jnp.pad(x, ((0, 0), (0, pad))).reshape(30, r_total, 128)
    t = jnp.pad(t, ((0, 0), (0, pad))).reshape(30, r_total, 128)
    off = jnp.pad(off, ((0, 0), (0, pad))).reshape(2, r_total, 128)

    kernel = functools.partial(_yolo_loss_kernel, cell=cell,
                               lambda_coord=float(lambda_coord),
                               lambda_noobj=float(lambda_noobj))

    tile_map = lambda c, i: (0, c * tiles_per_partial + i, 0)
    partials = pl.pallas_call(
        kernel,
        out_shape=jax.ShapeDtypeStruct((NUM_PARTIALS * 8, 128), jnp.float32),
        grid=(NUM_PARTIALS, tiles_per_partial),
        in_specs=[
            pl.BlockSpec((30, tr, 128), tile_map),
            pl.BlockSpec((30, tr, 128), tile_map),
            pl.BlockSpec((2, tr, 128), tile_map),
        ],
        out_specs=pl.BlockSpec((8, 128), lambda c, i: (c, 0)),
        compiler_params=pltpu.CompilerParams(
            dimension_semantics=("parallel", "arbitrary"),
            vmem_limit_bytes=32 * 1024 * 1024),
    )(x, t, off)

    return jnp.sum(partials) / bs


if __name__ == "__main__":
    key = jax.random.PRNGKey(0)
    bs, grid = 2, 7
    k1, k2, k3, k4 = jax.random.split(key, 4)

    # Synthetic prediction tensor (conv output, NCHW) and target tensor.
    x = jax.random.uniform(k1, (bs, 30, grid, grid), jnp.float32)
    tgt = jax.random.uniform(k2, (bs, grid, grid, 30), jnp.float32)
    # ~30% of cells contain an object (confidence channel 4 > 0).
    obj = (jax.random.uniform(k3, (bs, grid, grid)) > 0.7).astype(jnp.float32)
    conf = jax.random.uniform(k4, (bs, grid, grid)) * obj
    tgt = tgt.at[..., 4].set(conf)

    loss = yolo_loss(x, tgt, lambda_coord=5.0, lambda_noobj=0.5, grid=grid)
    loss = jax.block_until_ready(loss)
    assert jnp.isfinite(loss), f"non-finite loss: {loss}"
    print("KERNEL_OK")
</pallas_src>

<mosaic_0001>
module attributes {stable_mosaic.version = 11 : i64} {
  func.func @_yolo_loss_kernel(%arg0: i32, %arg1: i32, %arg2: memref<30x8x128xf32, #tpu.memory_space<vmem>>, %arg3: memref<30x8x128xf32, #tpu.memory_space<vmem>>, %arg4: memref<2x8x128xf32, #tpu.memory_space<vmem>>, %arg5: memref<8x128xf32, #tpu.memory_space<vmem>>) attributes {dimension_semantics = [#tpu.dimension_semantics<parallel>, #tpu.dimension_semantics<arbitrary>], iteration_bounds = array<i64: 2, 1>, scalar_prefetch = 0 : i64, scratch_operands = 0 : i64, tpu.core_type = #tpu.core_type<tc>, window_params = [{transform_indices = @transform_0, window_bounds = array<i64: 30, 8, 128>}, {transform_indices = @transform_1, window_bounds = array<i64: 30, 8, 128>}, {transform_indices = @transform_2, window_bounds = array<i64: 2, 8, 128>}, {transform_indices = @transform_3, window_bounds = array<i64: 8, 128>}]} {
    %c0_i32 = arith.constant 0 : i32
    %0 = arith.cmpi eq, %arg1, %c0_i32 : i32
    %1 = arith.extui %0 : i1 to i32
    %c0_i32_0 = arith.constant 0 : i32
    %2 = arith.cmpi ne, %1, %c0_i32_0 : i32
    scf.if %2 {
      %cst_280 = arith.constant 0.000000e+00 : f32
      %465 = vector.broadcast %cst_280 : f32 to vector<8x128xf32>
      %c0_281 = arith.constant 0 : index
      %c0_282 = arith.constant 0 : index
      %466 = vector.load %arg5[%c0_281, %c0_282] : memref<8x128xf32, #tpu.memory_space<vmem>>, vector<8x128xf32>
      tpu.vector_store %arg5[%c0_281, %c0_282], %465 {strides = array<i32>} : memref<8x128xf32, #tpu.memory_space<vmem>>, vector<8x128xf32>,
    } else {
    }
    %c0 = arith.constant 0 : index
    %c0_1 = arith.constant 0 : index
    %c0_2 = arith.constant 0 : index
    %3 = vector.load %arg4[%c0, %c0_1, %c0_2] : memref<2x8x128xf32, #tpu.memory_space<vmem>>, vector<1x8x128xf32>
    %4 = vector.shape_cast %3 : vector<1x8x128xf32> to vector<8x128xf32>
    %c1 = arith.constant 1 : index
    %c0_3 = arith.constant 0 : index
    %c0_4 = arith.constant 0 : index
    %5 = vector.load %arg4[%c1, %c0_3, %c0_4] : memref<2x8x128xf32, #tpu.memory_space<vmem>>, vector<1x8x128xf32>
    %6 = vector.shape_cast %5 : vector<1x8x128xf32> to vector<8x128xf32>
    %c0_5 = arith.constant 0 : index
    %c0_6 = arith.constant 0 : index
    %c0_7 = arith.constant 0 : index
    %7 = vector.load %arg2[%c0_5, %c0_6, %c0_7] : memref<30x8x128xf32, #tpu.memory_space<vmem>>, vector<1x8x128xf32>
    %8 = vector.shape_cast %7 : vector<1x8x128xf32> to vector<8x128xf32>
    %cst = arith.constant 6.400000e+01 : f32
    %9 = vector.broadcast %cst : f32 to vector<8x128xf32>
    %10 = arith.mulf %8, %9 : vector<8x128xf32>
    %11 = arith.addf %10, %4 : vector<8x128xf32>
    %c1_8 = arith.constant 1 : index
    %c0_9 = arith.constant 0 : index
    %c0_10 = arith.constant 0 : index
    %12 = vector.load %arg2[%c1_8, %c0_9, %c0_10] : memref<30x8x128xf32, #tpu.memory_space<vmem>>, vector<1x8x128xf32>
    %13 = vector.shape_cast %12 : vector<1x8x128xf32> to vector<8x128xf32>
    %cst_11 = arith.constant 6.400000e+01 : f32
    %14 = vector.broadcast %cst_11 : f32 to vector<8x128xf32>
    %15 = arith.mulf %13, %14 : vector<8x128xf32>
    %16 = arith.addf %15, %6 : vector<8x128xf32>
    %c2 = arith.constant 2 : index
    %c0_12 = arith.constant 0 : index
    %c0_13 = arith.constant 0 : index
    %17 = vector.load %arg2[%c2, %c0_12, %c0_13] : memref<30x8x128xf32, #tpu.memory_space<vmem>>, vector<1x8x128xf32>
    %18 = vector.shape_cast %17 : vector<1x8x128xf32> to vector<8x128xf32>
    %cst_14 = arith.constant 4.480000e+02 : f32
    %19 = vector.broadcast %cst_14 : f32 to vector<8x128xf32>
    %20 = arith.mulf %18, %19 : vector<8x128xf32>
    %c3 = arith.constant 3 : index
    %c0_15 = arith.constant 0 : index
    %c0_16 = arith.constant 0 : index
    %21 = vector.load %arg2[%c3, %c0_15, %c0_16] : memref<30x8x128xf32, #tpu.memory_space<vmem>>, vector<1x8x128xf32>
    %22 = vector.shape_cast %21 : vector<1x8x128xf32> to vector<8x128xf32>
    %cst_17 = arith.constant 4.480000e+02 : f32
    %23 = vector.broadcast %cst_17 : f32 to vector<8x128xf32>
    %24 = arith.mulf %22, %23 : vector<8x128xf32>
    %c0_18 = arith.constant 0 : index
    %c0_19 = arith.constant 0 : index
    %c0_20 = arith.constant 0 : index
    %25 = vector.load %arg3[%c0_18, %c0_19, %c0_20] : memref<30x8x128xf32, #tpu.memory_space<vmem>>, vector<1x8x128xf32>
    %26 = vector.shape_cast %25 : vector<1x8x128xf32> to vector<8x128xf32>
    %cst_21 = arith.constant 6.400000e+01 : f32
    %27 = vector.broadcast %cst_21 : f32 to vector<8x128xf32>
    %28 = arith.mulf %26, %27 : vector<8x128xf32>
    %29 = arith.addf %28, %4 : vector<8x128xf32>
    %c1_22 = arith.constant 1 : index
    %c0_23 = arith.constant 0 : index
    %c0_24 = arith.constant 0 : index
    %30 = vector.load %arg3[%c1_22, %c0_23, %c0_24] : memref<30x8x128xf32, #tpu.memory_space<vmem>>, vector<1x8x128xf32>
    %31 = vector.shape_cast %30 : vector<1x8x128xf32> to vector<8x128xf32>
    %cst_25 = arith.constant 6.400000e+01 : f32
    %32 = vector.broadcast %cst_25 : f32 to vector<8x128xf32>
    %33 = arith.mulf %31, %32 : vector<8x128xf32>
    %34 = arith.addf %33, %6 : vector<8x128xf32>
    %c2_26 = arith.constant 2 : index
    %c0_27 = arith.constant 0 : index
    %c0_28 = arith.constant 0 : index
    %35 = vector.load %arg3[%c2_26, %c0_27, %c0_28] : memref<30x8x128xf32, #tpu.memory_space<vmem>>, vector<1x8x128xf32>
    %36 = vector.shape_cast %35 : vector<1x8x128xf32> to vector<8x128xf32>
    %cst_29 = arith.constant 4.480000e+02 : f32
    %37 = vector.broadcast %cst_29 : f32 to vector<8x128xf32>
    %38 = arith.mulf %36, %37 : vector<8x128xf32>
    %c3_30 = arith.constant 3 : index
    %c0_31 = arith.constant 0 : index
    %c0_32 = arith.constant 0 : index
    %39 = vector.load %arg3[%c3_30, %c0_31, %c0_32] : memref<30x8x128xf32, #tpu.memory_space<vmem>>, vector<1x8x128xf32>
    %40 = vector.shape_cast %39 : vector<1x8x128xf32> to vector<8x128xf32>
    %cst_33 = arith.constant 4.480000e+02 : f32
    %41 = vector.broadcast %cst_33 : f32 to vector<8x128xf32>
    %42 = arith.mulf %40, %41 : vector<8x128xf32>
    %cst_34 = arith.constant 5.000000e-01 : f32
    %43 = vector.broadcast %cst_34 : f32 to vector<8x128xf32>
    %44 = arith.mulf %20, %43 : vector<8x128xf32>
    %45 = arith.subf %11, %44 : vector<8x128xf32>
    %cst_35 = arith.constant 0.000000e+00 : f32
    %cst_36 = arith.constant 4.480000e+02 : f32
    %46 = vector.broadcast %cst_35 : f32 to vector<8x128xf32>
    %47 = arith.maximumf %46, %45 : vector<8x128xf32>
    %48 = vector.broadcast %cst_36 : f32 to vector<8x128xf32>
    %49 = arith.minimumf %48, %47 : vector<8x128xf32>
    %cst_37 = arith.constant 5.000000e-01 : f32
    %50 = vector.broadcast %cst_37 : f32 to vector<8x128xf32>
    %51 = arith.mulf %24, %50 : vector<8x128xf32>
    %52 = arith.subf %16, %51 : vector<8x128xf32>
    %cst_38 = arith.constant 0.000000e+00 : f32
    %cst_39 = arith.constant 4.480000e+02 : f32
    %53 = vector.broadcast %cst_38 : f32 to vector<8x128xf32>
    %54 = arith.maximumf %53, %52 : vector<8x128xf32>
    %55 = vector.broadcast %cst_39 : f32 to vector<8x128xf32>
    %56 = arith.minimumf %55, %54 : vector<8x128xf32>
    %cst_40 = arith.constant 5.000000e-01 : f32
    %57 = vector.broadcast %cst_40 : f32 to vector<8x128xf32>
    %58 = arith.mulf %20, %57 : vector<8x128xf32>
    %59 = arith.addf %11, %58 : vector<8x128xf32>
    %cst_41 = arith.constant 0.000000e+00 : f32
    %cst_42 = arith.constant 4.480000e+02 : f32
    %60 = vector.broadcast %cst_41 : f32 to vector<8x128xf32>
    %61 = arith.maximumf %60, %59 : vector<8x128xf32>
    %62 = vector.broadcast %cst_42 : f32 to vector<8x128xf32>
    %63 = arith.minimumf %62, %61 : vector<8x128xf32>
    %cst_43 = arith.constant 5.000000e-01 : f32
    %64 = vector.broadcast %cst_43 : f32 to vector<8x128xf32>
    %65 = arith.mulf %24, %64 : vector<8x128xf32>
    %66 = arith.addf %16, %65 : vector<8x128xf32>
    %cst_44 = arith.constant 0.000000e+00 : f32
    %cst_45 = arith.constant 4.480000e+02 : f32
    %67 = vector.broadcast %cst_44 : f32 to vector<8x128xf32>
    %68 = arith.maximumf %67, %66 : vector<8x128xf32>
    %69 = vector.broadcast %cst_45 : f32 to vector<8x128xf32>
    %70 = arith.minimumf %69, %68 : vector<8x128xf32>
    %cst_46 = arith.constant 5.000000e-01 : f32
    %71 = vector.broadcast %cst_46 : f32 to vector<8x128xf32>
    %72 = arith.mulf %38, %71 : vector<8x128xf32>
    %73 = arith.subf %29, %72 : vector<8x128xf32>
    %cst_47 = arith.constant 0.000000e+00 : f32
    %cst_48 = arith.constant 4.480000e+02 : f32
    %74 = vector.broadcast %cst_47 : f32 to vector<8x128xf32>
    %75 = arith.maximumf %74, %73 : vector<8x128xf32>
    %76 = vector.broadcast %cst_48 : f32 to vector<8x128xf32>
    %77 = arith.minimumf %76, %75 : vector<8x128xf32>
    %cst_49 = arith.constant 5.000000e-01 : f32
    %78 = vector.broadcast %cst_49 : f32 to vector<8x128xf32>
    %79 = arith.mulf %42, %78 : vector<8x128xf32>
    %80 = arith.subf %34, %79 : vector<8x128xf32>
    %cst_50 = arith.constant 0.000000e+00 : f32
    %cst_51 = arith.constant 4.480000e+02 : f32
    %81 = vector.broadcast %cst_50 : f32 to vector<8x128xf32>
    %82 = arith.maximumf %81, %80 : vector<8x128xf32>
    %83 = vector.broadcast %cst_51 : f32 to vector<8x128xf32>
    %84 = arith.minimumf %83, %82 : vector<8x128xf32>
    %cst_52 = arith.constant 5.000000e-01 : f32
    %85 = vector.broadcast %cst_52 : f32 to vector<8x128xf32>
    %86 = arith.mulf %38, %85 : vector<8x128xf32>
    %87 = arith.addf %29, %86 : vector<8x128xf32>
    %cst_53 = arith.constant 0.000000e+00 : f32
    %cst_54 = arith.constant 4.480000e+02 : f32
    %88 = vector.broadcast %cst_53 : f32 to vector<8x128xf32>
    %89 = arith.maximumf %88, %87 : vector<8x128xf32>
    %90 = vector.broadcast %cst_54 : f32 to vector<8x128xf32>
    %91 = arith.minimumf %90, %89 : vector<8x128xf32>
    %cst_55 = arith.constant 5.000000e-01 : f32
    %92 = vector.broadcast %cst_55 : f32 to vector<8x128xf32>
    %93 = arith.mulf %42, %92 : vector<8x128xf32>
    %94 = arith.addf %34, %93 : vector<8x128xf32>
    %cst_56 = arith.constant 0.000000e+00 : f32
    %cst_57 = arith.constant 4.480000e+02 : f32
    %95 = vector.broadcast %cst_56 : f32 to vector<8x128xf32>
    %96 = arith.maximumf %95, %94 : vector<8x128xf32>
    %97 = vector.broadcast %cst_57 : f32 to vector<8x128xf32>
    %98 = arith.minimumf %97, %96 : vector<8x128xf32>
    %99 = arith.minimumf %63, %91 : vector<8x128xf32>
    %100 = arith.maximumf %49, %77 : vector<8x128xf32>
    %101 = arith.subf %99, %100 : vector<8x128xf32>
    %cst_58 = arith.constant 9.99999997E-7 : f32
    %102 = vector.broadcast %cst_58 : f32 to vector<8x128xf32>
    %103 = arith.maximumf %101, %102 : vector<8x128xf32>
    %104 = arith.minimumf %70, %98 : vector<8x128xf32>
    %105 = arith.maximumf %56, %84 : vector<8x128xf32>
    %106 = arith.subf %104, %105 : vector<8x128xf32>
    %cst_59 = arith.constant 9.99999997E-7 : f32
    %107 = vector.broadcast %cst_59 : f32 to vector<8x128xf32>
    %108 = arith.maximumf %106, %107 : vector<8x128xf32>
    %109 = arith.mulf %103, %108 : vector<8x128xf32>
    %110 = arith.subf %63, %49 : vector<8x128xf32>
    %111 = arith.subf %70, %56 : vector<8x128xf32>
    %112 = arith.mulf %110, %111 : vector<8x128xf32>
    %113 = arith.subf %91, %77 : vector<8x128xf32>
    %114 = arith.subf %98, %84 : vector<8x128xf32>
    %115 = arith.mulf %113, %114 : vector<8x128xf32>
    %116 = arith.addf %112, %115 : vector<8x128xf32>
    %117 = arith.subf %116, %109 : vector<8x128xf32>
    %118 = tpu.reciprocal %117 {approx = true} : vector<8x128xf32> -> vector<8x128xf32>
    %119 = arith.mulf %109, %118 : vector<8x128xf32>
    %c5 = arith.constant 5 : index
    %c0_60 = arith.constant 0 : index
    %c0_61 = arith.constant 0 : index
    %120 = vector.load %arg2[%c5, %c0_60, %c0_61] : memref<30x8x128xf32, #tpu.memory_space<vmem>>, vector<1x8x128xf32>
    %121 = vector.shape_cast %120 : vector<1x8x128xf32> to vector<8x128xf32>
    %cst_62 = arith.constant 6.400000e+01 : f32
    %122 = vector.broadcast %cst_62 : f32 to vector<8x128xf32>
    %123 = arith.mulf %121, %122 : vector<8x128xf32>
    %124 = arith.addf %123, %4 : vector<8x128xf32>
    %c6 = arith.constant 6 : index
    %c0_63 = arith.constant 0 : index
    %c0_64 = arith.constant 0 : index
    %125 = vector.load %arg2[%c6, %c0_63, %c0_64] : memref<30x8x128xf32, #tpu.memory_space<vmem>>, vector<1x8x128xf32>
    %126 = vector.shape_cast %125 : vector<1x8x128xf32> to vector<8x128xf32>
    %cst_65 = arith.constant 6.400000e+01 : f32
    %127 = vector.broadcast %cst_65 : f32 to vector<8x128xf32>
    %128 = arith.mulf %126, %127 : vector<8x128xf32>
    %129 = arith.addf %128, %6 : vector<8x128xf32>
    %c7 = arith.constant 7 : index
    %c0_66 = arith.constant 0 : index
    %c0_67 = arith.constant 0 : index
    %130 = vector.load %arg2[%c7, %c0_66, %c0_67] : memref<30x8x128xf32, #tpu.memory_space<vmem>>, vector<1x8x128xf32>
    %131 = vector.shape_cast %130 : vector<1x8x128xf32> to vector<8x128xf32>
    %cst_68 = arith.constant 4.480000e+02 : f32
    %132 = vector.broadcast %cst_68 : f32 to vector<8x128xf32>
    %133 = arith.mulf %131, %132 : vector<8x128xf32>
    %c8 = arith.constant 8 : index
    %c0_69 = arith.constant 0 : index
    %c0_70 = arith.constant 0 : index
    %134 = vector.load %arg2[%c8, %c0_69, %c0_70] : memref<30x8x128xf32, #tpu.memory_space<vmem>>, vector<1x8x128xf32>
    %135 = vector.shape_cast %134 : vector<1x8x128xf32> to vector<8x128xf32>
    %cst_71 = arith.constant 4.480000e+02 : f32
    %136 = vector.broadcast %cst_71 : f32 to vector<8x128xf32>
    %137 = arith.mulf %135, %136 : vector<8x128xf32>
    %c5_72 = arith.constant 5 : index
    %c0_73 = arith.constant 0 : index
    %c0_74 = arith.constant 0 : index
    %138 = vector.load %arg3[%c5_72, %c0_73, %c0_74] : memref<30x8x128xf32, #tpu.memory_space<vmem>>, vector<1x8x128xf32>
    %139 = vector.shape_cast %138 : vector<1x8x128xf32> to vector<8x128xf32>
    %cst_75 = arith.constant 6.400000e+01 : f32
    %140 = vector.broadcast %cst_75 : f32 to vector<8x128xf32>
    %141 = arith.mulf %139, %140 : vector<8x128xf32>
    %142 = arith.addf %141, %4 : vector<8x128xf32>
    %c6_76 = arith.constant 6 : index
    %c0_77 = arith.constant 0 : index
    %c0_78 = arith.constant 0 : index
    %143 = vector.load %arg3[%c6_76, %c0_77, %c0_78] : memref<30x8x128xf32, #tpu.memory_space<vmem>>, vector<1x8x128xf32>
    %144 = vector.shape_cast %143 : vector<1x8x128xf32> to vector<8x128xf32>
    %cst_79 = arith.constant 6.400000e+01 : f32
    %145 = vector.broadcast %cst_79 : f32 to vector<8x128xf32>
    %146 = arith.mulf %144, %145 : vector<8x128xf32>
    %147 = arith.addf %146, %6 : vector<8x128xf32>
    %c7_80 = arith.constant 7 : index
    %c0_81 = arith.constant 0 : index
    %c0_82 = arith.constant 0 : index
    %148 = vector.load %arg3[%c7_80, %c0_81, %c0_82] : memref<30x8x128xf32, #tpu.memory_space<vmem>>, vector<1x8x128xf32>
    %149 = vector.shape_cast %148 : vector<1x8x128xf32> to vector<8x128xf32>
    %cst_83 = arith.constant 4.480000e+02 : f32
    %150 = vector.broadcast %cst_83 : f32 to vector<8x128xf32>
    %151 = arith.mulf %149, %150 : vector<8x128xf32>
    %c8_84 = arith.constant 8 : index
    %c0_85 = arith.constant 0 : index
    %c0_86 = arith.constant 0 : index
    %152 = vector.load %arg3[%c8_84, %c0_85, %c0_86] : memref<30x8x128xf32, #tpu.memory_space<vmem>>, vector<1x8x128xf32>
    %153 = vector.shape_cast %152 : vector<1x8x128xf32> to vector<8x128xf32>
    %cst_87 = arith.constant 4.480000e+02 : f32
    %154 = vector.broadcast %cst_87 : f32 to vector<8x128xf32>
    %155 = arith.mulf %153, %154 : vector<8x128xf32>
    %cst_88 = arith.constant 5.000000e-01 : f32
    %156 = vector.broadcast %cst_88 : f32 to vector<8x128xf32>
    %157 = arith.mulf %133, %156 : vector<8x128xf32>
    %158 = arith.subf %124, %157 : vector<8x128xf32>
    %cst_89 = arith.constant 0.000000e+00 : f32
    %cst_90 = arith.constant 4.480000e+02 : f32
    %159 = vector.broadcast %cst_89 : f32 to vector<8x128xf32>
    %160 = arith.maximumf %159, %158 : vector<8x128xf32>
    %161 = vector.broadcast %cst_90 : f32 to vector<8x128xf32>
    %162 = arith.minimumf %161, %160 : vector<8x128xf32>
    %cst_91 = arith.constant 5.000000e-01 : f32
    %163 = vector.broadcast %cst_91 : f32 to vector<8x128xf32>
    %164 = arith.mulf %137, %163 : vector<8x128xf32>
    %165 = arith.subf %129, %164 : vector<8x128xf32>
    %cst_92 = arith.constant 0.000000e+00 : f32
    %cst_93 = arith.constant 4.480000e+02 : f32
    %166 = vector.broadcast %cst_92 : f32 to vector<8x128xf32>
    %167 = arith.maximumf %166, %165 : vector<8x128xf32>
    %168 = vector.broadcast %cst_93 : f32 to vector<8x128xf32>
    %169 = arith.minimumf %168, %167 : vector<8x128xf32>
    %cst_94 = arith.constant 5.000000e-01 : f32
    %170 = vector.broadcast %cst_94 : f32 to vector<8x128xf32>
    %171 = arith.mulf %133, %170 : vector<8x128xf32>
    %172 = arith.addf %124, %171 : vector<8x128xf32>
    %cst_95 = arith.constant 0.000000e+00 : f32
    %cst_96 = arith.constant 4.480000e+02 : f32
    %173 = vector.broadcast %cst_95 : f32 to vector<8x128xf32>
    %174 = arith.maximumf %173, %172 : vector<8x128xf32>
    %175 = vector.broadcast %cst_96 : f32 to vector<8x128xf32>
    %176 = arith.minimumf %175, %174 : vector<8x128xf32>
    %cst_97 = arith.constant 5.000000e-01 : f32
    %177 = vector.broadcast %cst_97 : f32 to vector<8x128xf32>
    %178 = arith.mulf %137, %177 : vector<8x128xf32>
    %179 = arith.addf %129, %178 : vector<8x128xf32>
    %cst_98 = arith.constant 0.000000e+00 : f32
    %cst_99 = arith.constant 4.480000e+02 : f32
    %180 = vector.broadcast %cst_98 : f32 to vector<8x128xf32>
    %181 = arith.maximumf %180, %179 : vector<8x128xf32>
    %182 = vector.broadcast %cst_99 : f32 to vector<8x128xf32>
    %183 = arith.minimumf %182, %181 : vector<8x128xf32>
    %cst_100 = arith.constant 5.000000e-01 : f32
    %184 = vector.broadcast %cst_100 : f32 to vector<8x128xf32>
    %185 = arith.mulf %151, %184 : vector<8x128xf32>
    %186 = arith.subf %142, %185 : vector<8x128xf32>
    %cst_101 = arith.constant 0.000000e+00 : f32
    %cst_102 = arith.constant 4.480000e+02 : f32
    %187 = vector.broadcast %cst_101 : f32 to vector<8x128xf32>
    %188 = arith.maximumf %187, %186 : vector<8x128xf32>
    %189 = vector.broadcast %cst_102 : f32 to vector<8x128xf32>
    %190 = arith.minimumf %189, %188 : vector<8x128xf32>
    %cst_103 = arith.constant 5.000000e-01 : f32
    %191 = vector.broadcast %cst_103 : f32 to vector<8x128xf32>
    %192 = arith.mulf %155, %191 : vector<8x128xf32>
    %193 = arith.subf %147, %192 : vector<8x128xf32>
    %cst_104 = arith.constant 0.000000e+00 : f32
    %cst_105 = arith.constant 4.480000e+02 : f32
    %194 = vector.broadcast %cst_104 : f32 to vector<8x128xf32>
    %195 = arith.maximumf %194, %193 : vector<8x128xf32>
    %196 = vector.broadcast %cst_105 : f32 to vector<8x128xf32>
    %197 = arith.minimumf %196, %195 : vector<8x128xf32>
    %cst_106 = arith.constant 5.000000e-01 : f32
    %198 = vector.broadcast %cst_106 : f32 to vector<8x128xf32>
    %199 = arith.mulf %151, %198 : vector<8x128xf32>
    %200 = arith.addf %142, %199 : vector<8x128xf32>
    %cst_107 = arith.constant 0.000000e+00 : f32
    %cst_108 = arith.constant 4.480000e+02 : f32
    %201 = vector.broadcast %cst_107 : f32 to vector<8x128xf32>
    %202 = arith.maximumf %201, %200 : vector<8x128xf32>
    %203 = vector.broadcast %cst_108 : f32 to vector<8x128xf32>
    %204 = arith.minimumf %203, %202 : vector<8x128xf32>
    %cst_109 = arith.constant 5.000000e-01 : f32
    %205 = vector.broadcast %cst_109 : f32 to vector<8x128xf32>
    %206 = arith.mulf %155, %205 : vector<8x128xf32>
    %207 = arith.addf %147, %206 : vector<8x128xf32>
    %cst_110 = arith.constant 0.000000e+00 : f32
    %cst_111 = arith.constant 4.480000e+02 : f32
    %208 = vector.broadcast %cst_110 : f32 to vector<8x128xf32>
    %209 = arith.maximumf %208, %207 : vector<8x128xf32>
    %210 = vector.broadcast %cst_111 : f32 to vector<8x128xf32>
    %211 = arith.minimumf %210, %209 : vector<8x128xf32>
    %212 = arith.minimumf %176, %204 : vector<8x128xf32>
    %213 = arith.maximumf %162, %190 : vector<8x128xf32>
    %214 = arith.subf %212, %213 : vector<8x128xf32>
    %cst_112 = arith.constant 9.99999997E-7 : f32
    %215 = vector.broadcast %cst_112 : f32 to vector<8x128xf32>
    %216 = arith.maximumf %214, %215 : vector<8x128xf32>
    %217 = arith.minimumf %183, %211 : vector<8x128xf32>
    %218 = arith.maximumf %169, %197 : vector<8x128xf32>
    %219 = arith.subf %217, %218 : vector<8x128xf32>
    %cst_113 = arith.constant 9.99999997E-7 : f32
    %220 = vector.broadcast %cst_113 : f32 to vector<8x128xf32>
    %221 = arith.maximumf %219, %220 : vector<8x128xf32>
    %222 = arith.mulf %216, %221 : vector<8x128xf32>
    %223 = arith.subf %176, %162 : vector<8x128xf32>
    %224 = arith.subf %183, %169 : vector<8x128xf32>
    %225 = arith.mulf %223, %224 : vector<8x128xf32>
    %226 = arith.subf %204, %190 : vector<8x128xf32>
    %227 = arith.subf %211, %197 : vector<8x128xf32>
    %228 = arith.mulf %226, %227 : vector<8x128xf32>
    %229 = arith.addf %225, %228 : vector<8x128xf32>
    %230 = arith.subf %229, %222 : vector<8x128xf32>
    %231 = tpu.reciprocal %230 {approx = true} : vector<8x128xf32> -> vector<8x128xf32>
    %232 = arith.mulf %222, %231 : vector<8x128xf32>
    %233 = arith.cmpf olt, %119, %232 : vector<8x128xf32>
    %234 = arith.select %233, %232, %119 : vector<8x128xi1>, vector<8x128xf32>
    %c4 = arith.constant 4 : index
    %c0_114 = arith.constant 0 : index
    %c0_115 = arith.constant 0 : index
    %235 = vector.load %arg3[%c4, %c0_114, %c0_115] : memref<30x8x128xf32, #tpu.memory_space<vmem>>, vector<1x8x128xf32>
    %236 = vector.shape_cast %235 : vector<1x8x128xf32> to vector<8x128xf32>
    %cst_116 = arith.constant 0.000000e+00 : f32
    %237 = vector.broadcast %cst_116 : f32 to vector<8x128xf32>
    %238 = arith.cmpf ogt, %236, %237 : vector<8x128xf32>
    %c2_117 = arith.constant 2 : index
    %c0_118 = arith.constant 0 : index
    %c0_119 = arith.constant 0 : index
    %239 = vector.load %arg2[%c2_117, %c0_118, %c0_119] : memref<30x8x128xf32, #tpu.memory_space<vmem>>, vector<1x8x128xf32>
    %240 = vector.shape_cast %239 : vector<1x8x128xf32> to vector<8x128xf32>
    %cst_120 = arith.constant 9.99999997E-7 : f32
    %cst_121 = arith.constant 1.000000e+06 : f32
    %241 = vector.broadcast %cst_120 : f32 to vector<8x128xf32>
    %242 = arith.maximumf %241, %240 : vector<8x128xf32>
    %243 = vector.broadcast %cst_121 : f32 to vector<8x128xf32>
    %244 = arith.minimumf %243, %242 : vector<8x128xf32>
    %c3_122 = arith.constant 3 : index
    %c0_123 = arith.constant 0 : index
    %c0_124 = arith.constant 0 : index
    %245 = vector.load %arg2[%c3_122, %c0_123, %c0_124] : memref<30x8x128xf32, #tpu.memory_space<vmem>>, vector<1x8x128xf32>
    %246 = vector.shape_cast %245 : vector<1x8x128xf32> to vector<8x128xf32>
    %cst_125 = arith.constant 9.99999997E-7 : f32
    %cst_126 = arith.constant 1.000000e+06 : f32
    %247 = vector.broadcast %cst_125 : f32 to vector<8x128xf32>
    %248 = arith.maximumf %247, %246 : vector<8x128xf32>
    %249 = vector.broadcast %cst_126 : f32 to vector<8x128xf32>
    %250 = arith.minimumf %249, %248 : vector<8x128xf32>
    %c7_127 = arith.constant 7 : index
    %c0_128 = arith.constant 0 : index
    %c0_129 = arith.constant 0 : index
    %251 = vector.load %arg2[%c7_127, %c0_128, %c0_129] : memref<30x8x128xf32, #tpu.memory_space<vmem>>, vector<1x8x128xf32>
    %252 = vector.shape_cast %251 : vector<1x8x128xf32> to vector<8x128xf32>
    %cst_130 = arith.constant 9.99999997E-7 : f32
    %cst_131 = arith.constant 1.000000e+06 : f32
    %253 = vector.broadcast %cst_130 : f32 to vector<8x128xf32>
    %254 = arith.maximumf %253, %252 : vector<8x128xf32>
    %255 = vector.broadcast %cst_131 : f32 to vector<8x128xf32>
    %256 = arith.minimumf %255, %254 : vector<8x128xf32>
    %c8_132 = arith.constant 8 : index
    %c0_133 = arith.constant 0 : index
    %c0_134 = arith.constant 0 : index
    %257 = vector.load %arg2[%c8_132, %c0_133, %c0_134] : memref<30x8x128xf32, #tpu.memory_space<vmem>>, vector<1x8x128xf32>
    %258 = vector.shape_cast %257 : vector<1x8x128xf32> to vector<8x128xf32>
    %cst_135 = arith.constant 9.99999997E-7 : f32
    %cst_136 = arith.constant 1.000000e+06 : f32
    %259 = vector.broadcast %cst_135 : f32 to vector<8x128xf32>
    %260 = arith.maximumf %259, %258 : vector<8x128xf32>
    %261 = vector.broadcast %cst_136 : f32 to vector<8x128xf32>
    %262 = arith.minimumf %261, %260 : vector<8x128xf32>
    %c5_137 = arith.constant 5 : index
    %c0_138 = arith.constant 0 : index
    %c0_139 = arith.constant 0 : index
    %263 = vector.load %arg2[%c5_137, %c0_138, %c0_139] : memref<30x8x128xf32, #tpu.memory_space<vmem>>, vector<1x8x128xf32>
    %264 = vector.shape_cast %263 : vector<1x8x128xf32> to vector<8x128xf32>
    %c0_140 = arith.constant 0 : index
    %c0_141 = arith.constant 0 : index
    %c0_142 = arith.constant 0 : index
    %265 = vector.load %arg2[%c0_140, %c0_141, %c0_142] : memref<30x8x128xf32, #tpu.memory_space<vmem>>, vector<1x8x128xf32>
    %266 = vector.shape_cast %265 : vector<1x8x128xf32> to vector<8x128xf32>
    %267 = arith.select %233, %264, %266 : vector<8x128xi1>, vector<8x128xf32>
    %c6_143 = arith.constant 6 : index
    %c0_144 = arith.constant 0 : index
    %c0_145 = arith.constant 0 : index
    %268 = vector.load %arg2[%c6_143, %c0_144, %c0_145] : memref<30x8x128xf32, #tpu.memory_space<vmem>>, vector<1x8x128xf32>
    %269 = vector.shape_cast %268 : vector<1x8x128xf32> to vector<8x128xf32>
    %c1_146 = arith.constant 1 : index
    %c0_147 = arith.constant 0 : index
    %c0_148 = arith.constant 0 : index
    %270 = vector.load %arg2[%c1_146, %c0_147, %c0_148] : memref<30x8x128xf32, #tpu.memory_space<vmem>>, vector<1x8x128xf32>
    %271 = vector.shape_cast %270 : vector<1x8x128xf32> to vector<8x128xf32>
    %272 = arith.select %233, %269, %271 : vector<8x128xi1>, vector<8x128xf32>
    %273 = arith.select %233, %256, %244 : vector<8x128xi1>, vector<8x128xf32>
    %274 = arith.select %233, %262, %250 : vector<8x128xi1>, vector<8x128xf32>
    %c9 = arith.constant 9 : index
    %c0_149 = arith.constant 0 : index
    %c0_150 = arith.constant 0 : index
    %275 = vector.load %arg2[%c9, %c0_149, %c0_150] : memref<30x8x128xf32, #tpu.memory_space<vmem>>, vector<1x8x128xf32>
    %276 = vector.shape_cast %275 : vector<1x8x128xf32> to vector<8x128xf32>
    %c4_151 = arith.constant 4 : index
    %c0_152 = arith.constant 0 : index
    %c0_153 = arith.constant 0 : index
    %277 = vector.load %arg2[%c4_151, %c0_152, %c0_153] : memref<30x8x128xf32, #tpu.memory_space<vmem>>, vector<1x8x128xf32>
    %278 = vector.shape_cast %277 : vector<1x8x128xf32> to vector<8x128xf32>
    %279 = arith.select %233, %276, %278 : vector<8x128xi1>, vector<8x128xf32>
    %c0_154 = arith.constant 0 : index
    %c0_155 = arith.constant 0 : index
    %c0_156 = arith.constant 0 : index
    %280 = vector.load %arg3[%c0_154, %c0_155, %c0_156] : memref<30x8x128xf32, #tpu.memory_space<vmem>>, vector<1x8x128xf32>
    %281 = vector.shape_cast %280 : vector<1x8x128xf32> to vector<8x128xf32>
    %c1_157 = arith.constant 1 : index
    %c0_158 = arith.constant 0 : index
    %c0_159 = arith.constant 0 : index
    %282 = vector.load %arg3[%c1_157, %c0_158, %c0_159] : memref<30x8x128xf32, #tpu.memory_space<vmem>>, vector<1x8x128xf32>
    %283 = vector.shape_cast %282 : vector<1x8x128xf32> to vector<8x128xf32>
    %c2_160 = arith.constant 2 : index
    %c0_161 = arith.constant 0 : index
    %c0_162 = arith.constant 0 : index
    %284 = vector.load %arg3[%c2_160, %c0_161, %c0_162] : memref<30x8x128xf32, #tpu.memory_space<vmem>>, vector<1x8x128xf32>
    %285 = vector.shape_cast %284 : vector<1x8x128xf32> to vector<8x128xf32>
    %cst_163 = arith.constant 1.000000e+00 : f32
    %286 = vector.broadcast %cst_163 : f32 to vector<8x128xf32>
    %287 = arith.select %238, %285, %286 : vector<8x128xi1>, vector<8x128xf32>
    %c3_164 = arith.constant 3 : index
    %c0_165 = arith.constant 0 : index
    %c0_166 = arith.constant 0 : index
    %288 = vector.load %arg3[%c3_164, %c0_165, %c0_166] : memref<30x8x128xf32, #tpu.memory_space<vmem>>, vector<1x8x128xf32>
    %289 = vector.shape_cast %288 : vector<1x8x128xf32> to vector<8x128xf32>
    %cst_167 = arith.constant 1.000000e+00 : f32
    %290 = vector.broadcast %cst_167 : f32 to vector<8x128xf32>
    %291 = arith.select %238, %289, %290 : vector<8x128xi1>, vector<8x128xf32>
    %c10 = arith.constant 10 : index
    %c0_168 = arith.constant 0 : index
    %c0_169 = arith.constant 0 : index
    %292 = vector.load %arg2[%c10, %c0_168, %c0_169] : memref<30x8x128xf32, #tpu.memory_space<vmem>>, vector<1x8x128xf32>
    %293 = vector.shape_cast %292 : vector<1x8x128xf32> to vector<8x128xf32>
    %c10_170 = arith.constant 10 : index
    %c0_171 = arith.constant 0 : index
    %c0_172 = arith.constant 0 : index
    %294 = vector.load %arg3[%c10_170, %c0_171, %c0_172] : memref<30x8x128xf32, #tpu.memory_space<vmem>>, vector<1x8x128xf32>
    %295 = vector.shape_cast %294 : vector<1x8x128xf32> to vector<8x128xf32>
    %296 = arith.subf %293, %295 : vector<8x128xf32>
    %297 = arith.mulf %296, %296 : vector<8x128xf32>
    %c11 = arith.constant 11 : index
    %c0_173 = arith.constant 0 : index
    %c0_174 = arith.constant 0 : index
    %298 = vector.load %arg2[%c11, %c0_173, %c0_174] : memref<30x8x128xf32, #tpu.memory_space<vmem>>, vector<1x8x128xf32>
    %299 = vector.shape_cast %298 : vector<1x8x128xf32> to vector<8x128xf32>
    %c11_175 = arith.constant 11 : index
    %c0_176 = arith.constant 0 : index
    %c0_177 = arith.constant 0 : index
    %300 = vector.load %arg3[%c11_175, %c0_176, %c0_177] : memref<30x8x128xf32, #tpu.memory_space<vmem>>, vector<1x8x128xf32>
    %301 = vector.shape_cast %300 : vector<1x8x128xf32> to vector<8x128xf32>
    %302 = arith.subf %299, %301 : vector<8x128xf32>
    %303 = arith.mulf %302, %302 : vector<8x128xf32>
    %304 = arith.addf %297, %303 : vector<8x128xf32>
    %c12 = arith.constant 12 : index
    %c0_178 = arith.constant 0 : index
    %c0_179 = arith.constant 0 : index
    %305 = vector.load %arg2[%c12, %c0_178, %c0_179] : memref<30x8x128xf32, #tpu.memory_space<vmem>>, vector<1x8x128xf32>
    %306 = vector.shape_cast %305 : vector<1x8x128xf32> to vector<8x128xf32>
    %c12_180 = arith.constant 12 : index
    %c0_181 = arith.constant 0 : index
    %c0_182 = arith.constant 0 : index
    %307 = vector.load %arg3[%c12_180, %c0_181, %c0_182] : memref<30x8x128xf32, #tpu.memory_space<vmem>>, vector<1x8x128xf32>
    %308 = vector.shape_cast %307 : vector<1x8x128xf32> to vector<8x128xf32>
    %309 = arith.subf %306, %308 : vector<8x128xf32>
    %310 = arith.mulf %309, %309 : vector<8x128xf32>
    %311 = arith.addf %304, %310 : vector<8x128xf32>
    %c13 = arith.constant 13 : index
    %c0_183 = arith.constant 0 : index
    %c0_184 = arith.constant 0 : index
    %312 = vector.load %arg2[%c13, %c0_183, %c0_184] : memref<30x8x128xf32, #tpu.memory_space<vmem>>, vector<1x8x128xf32>
    %313 = vector.shape_cast %312 : vector<1x8x128xf32> to vector<8x128xf32>
    %c13_185 = arith.constant 13 : index
    %c0_186 = arith.constant 0 : index
    %c0_187 = arith.constant 0 : index
    %314 = vector.load %arg3[%c13_185, %c0_186, %c0_187] : memref<30x8x128xf32, #tpu.memory_space<vmem>>, vector<1x8x128xf32>
    %315 = vector.shape_cast %314 : vector<1x8x128xf32> to vector<8x128xf32>
    %316 = arith.subf %313, %315 : vector<8x128xf32>
    %317 = arith.mulf %316, %316 : vector<8x128xf32>
    %318 = arith.addf %311, %317 : vector<8x128xf32>
    %c14 = arith.constant 14 : index
    %c0_188 = arith.constant 0 : index
    %c0_189 = arith.constant 0 : index
    %319 = vector.load %arg2[%c14, %c0_188, %c0_189] : memref<30x8x128xf32, #tpu.memory_space<vmem>>, vector<1x8x128xf32>
    %320 = vector.shape_cast %319 : vector<1x8x128xf32> to vector<8x128xf32>
    %c14_190 = arith.constant 14 : index
    %c0_191 = arith.constant 0 : index
    %c0_192 = arith.constant 0 : index
    %321 = vector.load %arg3[%c14_190, %c0_191, %c0_192] : memref<30x8x128xf32, #tpu.memory_space<vmem>>, vector<1x8x128xf32>
    %322 = vector.shape_cast %321 : vector<1x8x128xf32> to vector<8x128xf32>
    %323 = arith.subf %320, %322 : vector<8x128xf32>
    %324 = arith.mulf %323, %323 : vector<8x128xf32>
    %325 = arith.addf %318, %324 : vector<8x128xf32>
    %c15 = arith.constant 15 : index
    %c0_193 = arith.constant 0 : index
    %c0_194 = arith.constant 0 : index
    %326 = vector.load %arg2[%c15, %c0_193, %c0_194] : memref<30x8x128xf32, #tpu.memory_space<vmem>>, vector<1x8x128xf32>
    %327 = vector.shape_cast %326 : vector<1x8x128xf32> to vector<8x128xf32>
    %c15_195 = arith.constant 15 : index
    %c0_196 = arith.constant 0 : index
    %c0_197 = arith.constant 0 : index
    %328 = vector.load %arg3[%c15_195, %c0_196, %c0_197] : memref<30x8x128xf32, #tpu.memory_space<vmem>>, vector<1x8x128xf32>
    %329 = vector.shape_cast %328 : vector<1x8x128xf32> to vector<8x128xf32>
    %330 = arith.subf %327, %329 : vector<8x128xf32>
    %331 = arith.mulf %330, %330 : vector<8x128xf32>
    %332 = arith.addf %325, %331 : vector<8x128xf32>
    %c16 = arith.constant 16 : index
    %c0_198 = arith.constant 0 : index
    %c0_199 = arith.constant 0 : index
    %333 = vector.load %arg2[%c16, %c0_198, %c0_199] : memref<30x8x128xf32, #tpu.memory_space<vmem>>, vector<1x8x128xf32>
    %334 = vector.shape_cast %333 : vector<1x8x128xf32> to vector<8x128xf32>
    %c16_200 = arith.constant 16 : index
    %c0_201 = arith.constant 0 : index
    %c0_202 = arith.constant 0 : index
    %335 = vector.load %arg3[%c16_200, %c0_201, %c0_202] : memref<30x8x128xf32, #tpu.memory_space<vmem>>, vector<1x8x128xf32>
    %336 = vector.shape_cast %335 : vector<1x8x128xf32> to vector<8x128xf32>
    %337 = arith.subf %334, %336 : vector<8x128xf32>
    %338 = arith.mulf %337, %337 : vector<8x128xf32>
    %339 = arith.addf %332, %338 : vector<8x128xf32>
    %c17 = arith.constant 17 : index
    %c0_203 = arith.constant 0 : index
    %c0_204 = arith.constant 0 : index
    %340 = vector.load %arg2[%c17, %c0_203, %c0_204] : memref<30x8x128xf32, #tpu.memory_space<vmem>>, vector<1x8x128xf32>
    %341 = vector.shape_cast %340 : vector<1x8x128xf32> to vector<8x128xf32>
    %c17_205 = arith.constant 17 : index
    %c0_206 = arith.constant 0 : index
    %c0_207 = arith.constant 0 : index
    %342 = vector.load %arg3[%c17_205, %c0_206, %c0_207] : memref<30x8x128xf32, #tpu.memory_space<vmem>>, vector<1x8x128xf32>
    %343 = vector.shape_cast %342 : vector<1x8x128xf32> to vector<8x128xf32>
    %344 = arith.subf %341, %343 : vector<8x128xf32>
    %345 = arith.mulf %344, %344 : vector<8x128xf32>
    %346 = arith.addf %339, %345 : vector<8x128xf32>
    %c18 = arith.constant 18 : index
    %c0_208 = arith.constant 0 : index
    %c0_209 = arith.constant 0 : index
    %347 = vector.load %arg2[%c18, %c0_208, %c0_209] : memref<30x8x128xf32, #tpu.memory_space<vmem>>, vector<1x8x128xf32>
    %348 = vector.shape_cast %347 : vector<1x8x128xf32> to vector<8x128xf32>
    %c18_210 = arith.constant 18 : index
    %c0_211 = arith.constant 0 : index
    %c0_212 = arith.constant 0 : index
    %349 = vector.load %arg3[%c18_210, %c0_211, %c0_212] : memref<30x8x128xf32, #tpu.memory_space<vmem>>, vector<1x8x128xf32>
    %350 = vector.shape_cast %349 : vector<1x8x128xf32> to vector<8x128xf32>
    %351 = arith.subf %348, %350 : vector<8x128xf32>
    %352 = arith.mulf %351, %351 : vector<8x128xf32>
    %353 = arith.addf %346, %352 : vector<8x128xf32>
    %c19 = arith.constant 19 : index
    %c0_213 = arith.constant 0 : index
    %c0_214 = arith.constant 0 : index
    %354 = vector.load %arg2[%c19, %c0_213, %c0_214] : memref<30x8x128xf32, #tpu.memory_space<vmem>>, vector<1x8x128xf32>
    %355 = vector.shape_cast %354 : vector<1x8x128xf32> to vector<8x128xf32>
    %c19_215 = arith.constant 19 : index
    %c0_216 = arith.constant 0 : index
    %c0_217 = arith.constant 0 : index
    %356 = vector.load %arg3[%c19_215, %c0_216, %c0_217] : memref<30x8x128xf32, #tpu.memory_space<vmem>>, vector<1x8x128xf32>
    %357 = vector.shape_cast %356 : vector<1x8x128xf32> to vector<8x128xf32>
    %358 = arith.subf %355, %357 : vector<8x128xf32>
    %359 = arith.mulf %358, %358 : vector<8x128xf32>
    %360 = arith.addf %353, %359 : vector<8x128xf32>
    %c20 = arith.constant 20 : index
    %c0_218 = arith.constant 0 : index
    %c0_219 = arith.constant 0 : index
    %361 = vector.load %arg2[%c20, %c0_218, %c0_219] : memref<30x8x128xf32, #tpu.memory_space<vmem>>, vector<1x8x128xf32>
    %362 = vector.shape_cast %361 : vector<1x8x128xf32> to vector<8x128xf32>
    %c20_220 = arith.constant 20 : index
    %c0_221 = arith.constant 0 : index
    %c0_222 = arith.constant 0 : index
    %363 = vector.load %arg3[%c20_220, %c0_221, %c0_222] : memref<30x8x128xf32, #tpu.memory_space<vmem>>, vector<1x8x128xf32>
    %364 = vector.shape_cast %363 : vector<1x8x128xf32> to vector<8x128xf32>
    %365 = arith.subf %362, %364 : vector<8x128xf32>
    %366 = arith.mulf %365, %365 : vector<8x128xf32>
    %367 = arith.addf %360, %366 : vector<8x128xf32>
    %c21 = arith.constant 21 : index
    %c0_223 = arith.constant 0 : index
    %c0_224 = arith.constant 0 : index
    %368 = vector.load %arg2[%c21, %c0_223, %c0_224] : memref<30x8x128xf32, #tpu.memory_space<vmem>>, vector<1x8x128xf32>
    %369 = vector.shape_cast %368 : vector<1x8x128xf32> to vector<8x128xf32>
    %c21_225 = arith.constant 21 : index
    %c0_226 = arith.constant 0 : index
    %c0_227 = arith.constant 0 : index
    %370 = vector.load %arg3[%c21_225, %c0_226, %c0_227] : memref<30x8x128xf32, #tpu.memory_space<vmem>>, vector<1x8x128xf32>
    %371 = vector.shape_cast %370 : vector<1x8x128xf32> to vector<8x128xf32>
    %372 = arith.subf %369, %371 : vector<8x128xf32>
    %373 = arith.mulf %372, %372 : vector<8x128xf32>
    %374 = arith.addf %367, %373 : vector<8x128xf32>
    %c22 = arith.constant 22 : index
    %c0_228 = arith.constant 0 : index
    %c0_229 = arith.constant 0 : index
    %375 = vector.load %arg2[%c22, %c0_228, %c0_229] : memref<30x8x128xf32, #tpu.memory_space<vmem>>, vector<1x8x128xf32>
    %376 = vector.shape_cast %375 : vector<1x8x128xf32> to vector<8x128xf32>
    %c22_230 = arith.constant 22 : index
    %c0_231 = arith.constant 0 : index
    %c0_232 = arith.constant 0 : index
    %377 = vector.load %arg3[%c22_230, %c0_231, %c0_232] : memref<30x8x128xf32, #tpu.memory_space<vmem>>, vector<1x8x128xf32>
    %378 = vector.shape_cast %377 : vector<1x8x128xf32> to vector<8x128xf32>
    %379 = arith.subf %376, %378 : vector<8x128xf32>
    %380 = arith.mulf %379, %379 : vector<8x128xf32>
    %381 = arith.addf %374, %380 : vector<8x128xf32>
    %c23 = arith.constant 23 : index
    %c0_233 = arith.constant 0 : index
    %c0_234 = arith.constant 0 : index
    %382 = vector.load %arg2[%c23, %c0_233, %c0_234] : memref<30x8x128xf32, #tpu.memory_space<vmem>>, vector<1x8x128xf32>
    %383 = vector.shape_cast %382 : vector<1x8x128xf32> to vector<8x128xf32>
    %c23_235 = arith.constant 23 : index
    %c0_236 = arith.constant 0 : index
    %c0_237 = arith.constant 0 : index
    %384 = vector.load %arg3[%c23_235, %c0_236, %c0_237] : memref<30x8x128xf32, #tpu.memory_space<vmem>>, vector<1x8x128xf32>
    %385 = vector.shape_cast %384 : vector<1x8x128xf32> to vector<8x128xf32>
    %386 = arith.subf %383, %385 : vector<8x128xf32>
    %387 = arith.mulf %386, %386 : vector<8x128xf32>
    %388 = arith.addf %381, %387 : vector<8x128xf32>
    %c24 = arith.constant 24 : index
    %c0_238 = arith.constant 0 : index
    %c0_239 = arith.constant 0 : index
    %389 = vector.load %arg2[%c24, %c0_238, %c0_239] : memref<30x8x128xf32, #tpu.memory_space<vmem>>, vector<1x8x128xf32>
    %390 = vector.shape_cast %389 : vector<1x8x128xf32> to vector<8x128xf32>
    %c24_240 = arith.constant 24 : index
    %c0_241 = arith.constant 0 : index
    %c0_242 = arith.constant 0 : index
    %391 = vector.load %arg3[%c24_240, %c0_241, %c0_242] : memref<30x8x128xf32, #tpu.memory_space<vmem>>, vector<1x8x128xf32>
    %392 = vector.shape_cast %391 : vector<1x8x128xf32> to vector<8x128xf32>
    %393 = arith.subf %390, %392 : vector<8x128xf32>
    %394 = arith.mulf %393, %393 : vector<8x128xf32>
    %395 = arith.addf %388, %394 : vector<8x128xf32>
    %c25 = arith.constant 25 : index
    %c0_243 = arith.constant 0 : index
    %c0_244 = arith.constant 0 : index
    %396 = vector.load %arg2[%c25, %c0_243, %c0_244] : memref<30x8x128xf32, #tpu.memory_space<vmem>>, vector<1x8x128xf32>
    %397 = vector.shape_cast %396 : vector<1x8x128xf32> to vector<8x128xf32>
    %c25_245 = arith.constant 25 : index
    %c0_246 = arith.constant 0 : index
    %c0_247 = arith.constant 0 : index
    %398 = vector.load %arg3[%c25_245, %c0_246, %c0_247] : memref<30x8x128xf32, #tpu.memory_space<vmem>>, vector<1x8x128xf32>
    %399 = vector.shape_cast %398 : vector<1x8x128xf32> to vector<8x128xf32>
    %400 = arith.subf %397, %399 : vector<8x128xf32>
    %401 = arith.mulf %400, %400 : vector<8x128xf32>
    %402 = arith.addf %395, %401 : vector<8x128xf32>
    %c26 = arith.constant 26 : index
    %c0_248 = arith.constant 0 : index
    %c0_249 = arith.constant 0 : index
    %403 = vector.load %arg2[%c26, %c0_248, %c0_249] : memref<30x8x128xf32, #tpu.memory_space<vmem>>, vector<1x8x128xf32>
    %404 = vector.shape_cast %403 : vector<1x8x128xf32> to vector<8x128xf32>
    %c26_250 = arith.constant 26 : index
    %c0_251 = arith.constant 0 : index
    %c0_252 = arith.constant 0 : index
    %405 = vector.load %arg3[%c26_250, %c0_251, %c0_252] : memref<30x8x128xf32, #tpu.memory_space<vmem>>, vector<1x8x128xf32>
    %406 = vector.shape_cast %405 : vector<1x8x128xf32> to vector<8x128xf32>
    %407 = arith.subf %404, %406 : vector<8x128xf32>
    %408 = arith.mulf %407, %407 : vector<8x128xf32>
    %409 = arith.addf %402, %408 : vector<8x128xf32>
    %c27 = arith.constant 27 : index
    %c0_253 = arith.constant 0 : index
    %c0_254 = arith.constant 0 : index
    %410 = vector.load %arg2[%c27, %c0_253, %c0_254] : memref<30x8x128xf32, #tpu.memory_space<vmem>>, vector<1x8x128xf32>
    %411 = vector.shape_cast %410 : vector<1x8x128xf32> to vector<8x128xf32>
    %c27_255 = arith.constant 27 : index
    %c0_256 = arith.constant 0 : index
    %c0_257 = arith.constant 0 : index
    %412 = vector.load %arg3[%c27_255, %c0_256, %c0_257] : memref<30x8x128xf32, #tpu.memory_space<vmem>>, vector<1x8x128xf32>
    %413 = vector.shape_cast %412 : vector<1x8x128xf32> to vector<8x128xf32>
    %414 = arith.subf %411, %413 : vector<8x128xf32>
    %415 = arith.mulf %414, %414 : vector<8x128xf32>
    %416 = arith.addf %409, %415 : vector<8x128xf32>
    %c28 = arith.constant 28 : index
    %c0_258 = arith.constant 0 : index
    %c0_259 = arith.constant 0 : index
    %417 = vector.load %arg2[%c28, %c0_258, %c0_259] : memref<30x8x128xf32, #tpu.memory_space<vmem>>, vector<1x8x128xf32>
    %418 = vector.shape_cast %417 : vector<1x8x128xf32> to vector<8x128xf32>
    %c28_260 = arith.constant 28 : index
    %c0_261 = arith.constant 0 : index
    %c0_262 = arith.constant 0 : index
    %419 = vector.load %arg3[%c28_260, %c0_261, %c0_262] : memref<30x8x128xf32, #tpu.memory_space<vmem>>, vector<1x8x128xf32>
    %420 = vector.shape_cast %419 : vector<1x8x128xf32> to vector<8x128xf32>
    %421 = arith.subf %418, %420 : vector<8x128xf32>
    %422 = arith.mulf %421, %421 : vector<8x128xf32>
    %423 = arith.addf %416, %422 : vector<8x128xf32>
    %c29 = arith.constant 29 : index
    %c0_263 = arith.constant 0 : index
    %c0_264 = arith.constant 0 : index
    %424 = vector.load %arg2[%c29, %c0_263, %c0_264] : memref<30x8x128xf32, #tpu.memory_space<vmem>>, vector<1x8x128xf32>
    %425 = vector.shape_cast %424 : vector<1x8x128xf32> to vector<8x128xf32>
    %c29_265 = arith.constant 29 : index
    %c0_266 = arith.constant 0 : index
    %c0_267 = arith.constant 0 : index
    %426 = vector.load %arg3[%c29_265, %c0_266, %c0_267] : memref<30x8x128xf32, #tpu.memory_space<vmem>>, vector<1x8x128xf32>
    %427 = vector.shape_cast %426 : vector<1x8x128xf32> to vector<8x128xf32>
    %428 = arith.subf %425, %427 : vector<8x128xf32>
    %429 = arith.mulf %428, %428 : vector<8x128xf32>
    %430 = arith.addf %423, %429 : vector<8x128xf32>
    %431 = math.sqrt %273 : vector<8x128xf32>
    %432 = math.sqrt %287 : vector<8x128xf32>
    %433 = arith.subf %431, %432 : vector<8x128xf32>
    %434 = math.sqrt %274 : vector<8x128xf32>
    %435 = math.sqrt %291 : vector<8x128xf32>
    %436 = arith.subf %434, %435 : vector<8x128xf32>
    %437 = arith.subf %267, %281 : vector<8x128xf32>
    %438 = arith.mulf %437, %437 : vector<8x128xf32>
    %439 = arith.subf %272, %283 : vector<8x128xf32>
    %440 = arith.mulf %439, %439 : vector<8x128xf32>
    %441 = arith.addf %438, %440 : vector<8x128xf32>
    %442 = arith.mulf %433, %433 : vector<8x128xf32>
    %443 = arith.addf %441, %442 : vector<8x128xf32>
    %444 = arith.mulf %436, %436 : vector<8x128xf32>
    %445 = arith.addf %443, %444 : vector<8x128xf32>
    %cst_268 = arith.constant 5.000000e+00 : f32
    %446 = vector.broadcast %cst_268 : f32 to vector<8x128xf32>
    %447 = arith.mulf %446, %445 : vector<8x128xf32>
    %448 = arith.subf %279, %234 : vector<8x128xf32>
    %449 = arith.mulf %448, %448 : vector<8x128xf32>
    %450 = arith.addf %447, %449 : vector<8x128xf32>
    %451 = arith.addf %450, %430 : vector<8x128xf32>
    %c4_269 = arith.constant 4 : index
    %c0_270 = arith.constant 0 : index
    %c0_271 = arith.constant 0 : index
    %452 = vector.load %arg2[%c4_269, %c0_270, %c0_271] : memref<30x8x128xf32, #tpu.memory_space<vmem>>, vector<1x8x128xf32>
    %453 = vector.shape_cast %452 : vector<1x8x128xf32> to vector<8x128xf32>
    %454 = arith.mulf %453, %453 : vector<8x128xf32>
    %c9_272 = arith.constant 9 : index
    %c0_273 = arith.constant 0 : index
    %c0_274 = arith.constant 0 : index
    %455 = vector.load %arg2[%c9_272, %c0_273, %c0_274] : memref<30x8x128xf32, #tpu.memory_space<vmem>>, vector<1x8x128xf32>
    %456 = vector.shape_cast %455 : vector<1x8x128xf32> to vector<8x128xf32>
    %457 = arith.mulf %456, %456 : vector<8x128xf32>
    %458 = arith.addf %454, %457 : vector<8x128xf32>
    %cst_275 = arith.constant 5.000000e-01 : f32
    %459 = vector.broadcast %cst_275 : f32 to vector<8x128xf32>
    %460 = arith.mulf %459, %458 : vector<8x128xf32>
    %461 = arith.select %238, %451, %460 : vector<8x128xi1>, vector<8x128xf32>
    %c0_276 = arith.constant 0 : index
    %c0_277 = arith.constant 0 : index
    %462 = vector.load %arg5[%c0_276, %c0_277] : memref<8x128xf32, #tpu.memory_space<vmem>>, vector<8x128xf32>
    %463 = arith.addf %462, %461 : vector<8x128xf32>
    %c0_278 = arith.constant 0 : index
    %c0_279 = arith.constant 0 : index
    %464 = vector.load %arg5[%c0_278, %c0_279] : memref<8x128xf32, #tpu.memory_space<vmem>>, vector<8x128xf32>
    tpu.vector_store %arg5[%c0_278, %c0_279], %463 {strides = array<i32>} : memref<8x128xf32, #tpu.memory_space<vmem>>, vector<8x128xf32>,
    return
  }
  func.func @transform_0(%arg0: i32, %arg1: i32) -> (i32, i32, i32) {
    %c1_i32 = arith.constant 1 : i32
    %0 = arith.muli %arg0, %c1_i32 : i32
    %1 = arith.addi %0, %arg1 : i32
    %c0_i32 = arith.constant 0 : i32
    %c0_i32_0 = arith.constant 0 : i32
    %c0_i32_1 = arith.constant 0 : i32
    return %c0_i32, %1, %c0_i32_0 : i32, i32, i32
  }
  func.func @transform_1(%arg0: i32, %arg1: i32) -> (i32, i32, i32) {
    %c1_i32 = arith.constant 1 : i32
    %0 = arith.muli %arg0, %c1_i32 : i32
    %1 = arith.addi %0, %arg1 : i32
    %c0_i32 = arith.constant 0 : i32
    %c0_i32_0 = arith.constant 0 : i32
    %c0_i32_1 = arith.constant 0 : i32
    return %c0_i32, %1, %c0_i32_0 : i32, i32, i32
  }
  func.func @transform_2(%arg0: i32, %arg1: i32) -> (i32, i32, i32) {
    %c1_i32 = arith.constant 1 : i32
    %0 = arith.muli %arg0, %c1_i32 : i32
    %1 = arith.addi %0, %arg1 : i32
    %c0_i32 = arith.constant 0 : i32
    %c0_i32_0 = arith.constant 0 : i32
    %c0_i32_1 = arith.constant 0 : i32
    return %c0_i32, %1, %c0_i32_0 : i32, i32, i32
  }
  func.func @transform_3(%arg0: i32, %arg1: i32) -> (i32, i32) {
    %c0_i32 = arith.constant 0 : i32
    %c0_i32_0 = arith.constant 0 : i32
    return %arg0, %c0_i32 : i32, i32
  }
}

</mosaic_0001>

<bundles_post_ra>
// kernel: tpu_custom_call.1
= control target key start
LH: loop header
LB: loop body
LE: loop exit
PB: predicated region body
PF: predicated region fallthrough
CT: control target
= control target key end

     0   :  { %s1555_s0 = inlined_call_operand.hbm [shape: f32[30,16,128], index: 0, kind: input, shape index: {}]   ;;  %s1556_s1 = inlined_call_operand.hbm [shape: f32[30,16,128], index: 1, kind: input, shape index: {}]   ;;  %s1557_s2 = inlined_call_operand.hbm [shape: f32[2,16,128], index: 2, kind: input, shape index: {}]   ;;  %s1558_s3 = inlined_call_operand.hbm [shape: f32[16,128], index: 3, kind: output, shape index: {}]  }
   0x1   :  { %1563 = sst [smem:[#allocation15_spill]] %s1555_s0 }
   0x2   :  { %1564 = sst [smem:[#allocation16_spill]] %s1556_s1 }
   0x3   :  { %8 = vsyncpa [#allocation3], 0 }
   0x4   :  { %10 = vsyncpa [#allocation3 + $0x1], 0 }
   0x5   :  { %11 = vsyncpa [#allocation6], 0 }
   0x6   :  { %13 = vsyncpa [#allocation6 + $0x1], 0 }
   0x7   :  { %14 = vsyncpa [#allocation4], 0 }
   0x8   :  { %16 = vsyncpa [#allocation4 + $0x1], 0  ;;  %s1157_s12 = smov 0   ;;  %s1159_s13 = smov 0  }
   0x9   :  { %s1161_s14 = smov 0   ;;  %s1163_s15 = smov 0  }
   0xa   :  { %s1165_s16 = smov 0   ;;  %s1167_s17 = smov 0  }
   0xb LB: > { %1565 = sst [smem:[#allocation12_spill]] %s1124_s16  ;;  %s1188_s18 = sadd.s32 4294967295, %s1128_s17   ;;  %s1128_s17 = sphi %s1167_s17, %s22_s17   ;;  %s1124_s16 = sphi %s1165_s16, %s1582_s16   ;;  %s1120_s15 = sphi %s1163_s15, %s1581_s15   ;;  %s1116_s14 = sphi %s1161_s14, %s1585_s14   ;;  %s1112_s13 = sphi %s1159_s13, %s1584_s13   ;;  %s1108_s12 = sphi %s1157_s12, %s1583_s12  }
   0xc   : > { %s797_s19 = sadd.s32 4294967294, %s1128_s17   ;;  %s34_s20 = sadd.s32 1, %s1124_s16 }
   0xd   : > { %s43_s21 = sadd.s32 1, %s1116_s14  ;;  %p36_p0 = scmp.ge.s32.totalorder %s34_s20, 2 }
   0xe   : > { %p50_p1 = scmp.ne.s32.totalorder %s1116_s14, %s1112_s13  ;;  %p51_p2 = scmp.eq.s32.totalorder %s1128_s17, 0 }
   0xf   : > { %p56_p3 = scmp.ne.s32.totalorder %s1112_s13, %s1108_s12  ;;  %s1587_s20 = smov (%p36_p0, %s34_s20), 0 }
  0x10   : > { %1566 = sst [smem:[#allocation13_spill]] %s1587_s20  ;;  %p1200_p4 = por %p51_p2, %p50_p1 }
  0x11   : > { %p57_p5 = scmp.eq.s32.totalorder %s1188_s18, 0  ;;  %s40_s23 = ssub.s32 %s1124_s16, %s1587_s20 }
  0x12   : > { %p136_p6 = scmp.eq.s32.totalorder %s1188_s18, 1  ;;  %p41_p7 = scmp.eq.s32.totalorder %s40_s23, 0 }
  0x13   : > { %p1208_p8 = por %p57_p5, %p56_p3  ;;  %p142_p10 = scmp.eq.s32.totalorder %s797_s19, 1 }
  0x14   : > { %p1212_p9 = por %p136_p6, %p50_p1  ;;  %p894_p13 = scmp.lt.s32.totalorder %s1128_s17, 2 }
  0x15   : > { %s1217_s26 = scalar_select %p41_p7, %s1116_s14, %s43_s21  }
  0x16   : > { %p1219_p11 = por %p142_p10, %p56_p3  ;;  %s1226_s28 = sand.u32 1, %s1116_s14  }
  0x17   : > { %1570 = sst [smem:[#allocation14_spill]] %s1217_s26  ;;  %s869_s29 = smul.u32 240, %s1226_s28 }
  0x18   : > { %s1230_s30 = sshll.u32 %s1124_s16, 7  ;;  %p1234_p0 = pnand %p894_p13, %p1200_p4 }
  0x19   : > { %s183_s5 = sand.u32 1, %s1128_s17   ;;  %s1573_s1 = sld [smem:[#allocation16_spill]] }
  0x1a   : > { %s187_s9 = scalar_lea.vmem [#allocation5], %s869_s29  ;;  %p804_p1 = scmp.ge.s32.totalorder %s1128_s17, 1 }
  0x1b   : > { %s194_s10 = sshll.u32 %s187_s9, 4  ;;  %s1246_s11 = scalar_lea.sflag [#allocation6], %s183_s5  ;;  %s195_s10 = int_to_ptr.vmem [resolvable:$true] %s194_s10 }
  0x1c   : > { %p962_p2 = pneg %p1234_p0  ;;  %s973_s19 = scalar_lea.vmem %s195_s10, 3840 }
  0x1d   : > { %p974_p3 = scmp.ne.s32.totalorder %s195_s10, %s973_s19  ;;  %s1130_s21 = smov [#allocation5]  }
  0x1e   : > { %s978_s22 = sshll.u32 %s1130_s21, 4  ;;  %s979_s22 = int_to_ptr.vmem [resolvable:$false] %s978_s22 }
  0x1f   : > { %s193_s8 = scalar_lea.hbm %s1573_s1, %s1230_s30  ;;  %p976_p4 = pnand %p974_p3, %p962_p2 }
  0x20   : > { %s980_s23 = scalar_lea.vmem %s979_s22, 7680  ;;  %p981_p6 = scmp.lt.s32.totalorder %s195_s10, %s979_s22 }
  0x21   : > { %p977_p5 = pneg %p976_p4  ;;  %p982_p7 = scmp.lt.s32.totalorder %s980_s23, %s973_s19 }
  0x23   : > { %p983_p10 = por %p982_p7, %p981_p6 }
  0x25   : > { %p984_p13 = pnand %p983_p10, %p977_p5 }
  0x27   : > { %987 = shalt.err (!%p984_p13)
}
  0x28   : > { %s1561_s6 = smov 256   ;;  %s1132_s5 = smov 128  }
  0x29   : > { %s1133_s7 = smov 8   ;;  %p223_p3 = scmp.lt.s32.totalorder %s1128_s17, 3 }
  0x2a   : > { %886 = dma.hbm_to_vmem [thread:$0]  (!%p1234_p0), %s193_s8, 3840, %s195_s10, %s1246_s11, %s1561_s6, %s1132_s5, %s1133_s7  }
  0x2b   : > { %p1262_p4 = pnand %p804_p1, %p223_p3  ;;  %s1575_s0 = sld [smem:[#allocation15_spill]] }
  0x2c   : > { %s166_s23 = scalar_lea.vmem [#allocation2], %s869_s29  ;;  %s802_s20 = sshll.u32 %s1226_s28, 4 }
  0x2d   : > { %s173_s1 = sshll.u32 %s166_s23, 4  ;;  %s163_s16 = scalar_lea.sflag [#allocation3], %s1226_s28  ;;  %s174_s1 = int_to_ptr.vmem [resolvable:$true] %s173_s1 }
  0x2e   : > { %s1001_s26 = scalar_lea.vmem %s174_s1, 3840  ;;  %s1134_s8 = smov [#allocation2]  }
  0x2f   : > { %p1002_p5 = scmp.ne.s32.totalorder %s174_s1, %s1001_s26  ;;  %s1006_s10 = sshll.u32 %s1134_s8, 4  ;;  %s1007_s10 = int_to_ptr.vmem [resolvable:$false] %s1006_s10 }
  0x30   : > { %s1008_s6 = scalar_lea.vmem %s1007_s10, 7680  ;;  %p1009_p1 = scmp.lt.s32.totalorder %s174_s1, %s1007_s10 }
  0x31   : > { %s172_s22 = scalar_lea.hbm %s1575_s0, %s1230_s30  ;;  %p1004_p6 = pnand %p1002_p5, %p962_p2 }
  0x32   : > { %p1010_p10 = scmp.lt.s32.totalorder %s1008_s6, %s1001_s26 }
  0x33   : > { %p1005_p7 = pneg %p1004_p6 }
  0x34   : > { %p1011_p13 = por %p1010_p10, %p1009_p1 }
  0x36   : > { %p1012_p3 = pnand %p1011_p13, %p1005_p7 }
  0x38   : > { %1015 = shalt.err (!%p1012_p3)
}
  0x39   : > { %s1576_s28 = smov 256   ;;  %s214_s21 = scalar_lea.hbm %s1557_s2, %s1230_s30 }
  0x3a   : > { %883 = dma.hbm_to_vmem [thread:$0]  (!%p1234_p0), %s172_s22, 3840, %s174_s1, %s163_s16, %s1576_s28, %s1132_s5, %s1133_s7  }
  0x3b   : > { %s208_s23 = scalar_lea.vmem [#allocation7], %s802_s20  ;;  %s1135_s26 = smov [#allocation7]  }
  0x3c   : > { %s215_s8 = sshll.u32 %s208_s23, 4  ;;  %s1034_s6 = sshll.u32 %s1135_s26, 4  ;;  %s216_s8 = int_to_ptr.vmem [resolvable:$true] %s215_s8  ;;  %s1035_s6 = int_to_ptr.vmem [resolvable:$false] %s1034_s6 }
  0x3d   : > { %s1029_s10 = scalar_lea.vmem %s216_s8, 256  ;;  %s1036_s0 = scalar_lea.vmem %s1035_s6, 512 }
  0x3e   : > { %p1030_p5 = scmp.ne.s32.totalorder %s216_s8, %s1029_s10  ;;  %p1037_p1 = scmp.lt.s32.totalorder %s216_s8, %s1035_s6 }
  0x3f   : > { %p1038_p10 = scmp.lt.s32.totalorder %s1036_s0, %s1029_s10 }
  0x40   : > { %p1032_p6 = pnand %p1030_p5, %p962_p2 }
  0x41   : > { %p1039_p13 = por %p1038_p10, %p1037_p1 }
  0x42   : > { %p1033_p7 = pneg %p1032_p6 }
  0x44   : > { %p1040_p3 = pnand %p1039_p13, %p1033_p7 }
  0x46   : > { %1043 = shalt.err (!%p1040_p3)
}
  0x47   : > { %889 = dma.hbm_to_vmem [thread:$0]  (!%p1234_p0), %s214_s21, 256, %s216_s8, %s1246_s11, %s1576_s28, %s1132_s5, %s1133_s7  }
  0x48   : > { %227 = sbr.rel (%p1262_p4) target bundleno = 185 (0xb9), region = 32  ;;  %s1298_s1 = sand.u32 (!%p1262_p4), 1, %s1112_s13  }
  0x49   : > { %s871_s0 = smul.u32 (!%p1262_p4), 240, %s1298_s1  ;;  %s230_s16 = scalar_lea.sflag (!%p1262_p4), [#allocation3], %s1298_s1 }
  0x4b   : > { %s1302_s20 = scalar_lea.vmem (!%p1262_p4), [#allocation2], %s871_s0 }
  0x4d   : > { %1095 = dma.done.wait (%p1208_p8), %s230_s16, 3840  }
  0x4e   : > { %1097 = vsyncadd (%p1208_p8), %s230_s16, 4294963456  ;;  %s238_s30 = sand.u32 1, %s1188_s18   ;;  %s1309_s11 = scalar_lea.vmem [#allocation5], %s871_s0 }
  0x4f   : > { %s239_s4 = scalar_lea.sflag [#allocation6], %s238_s30 }
  0x50   : > { %1099 = dma.done.wait (%p1208_p8), %s239_s4, 4096  }
  0x51   : > { %1101 = vsyncadd (%p1208_p8), %s239_s4, 4294963200  ;;  %s805_s5 = sshll.u32 %s1298_s1, 4  ;;  %v1321_v2 = vld [vmem:[%s1302_s20] sm:$0xff]  ;;  %v1325_v4 = vld [vmem:[%s1302_s20 + $0x8] sm:$0xff]  ;;  %s806_s18 = sshll.u32 %s1298_s1, 3 }
  0x52   : > { %s251_s7 = scalar_lea.vmem [#allocation7], %s805_s5  ;;  %v296_v3 = vmul.f32 64.0, %v1321_v2  ;;  %v1328_v5 = vld [vmem:[%s1302_s20 + $0x10] sm:$0xff]  ;;  %v1331_v6 = vld [vmem:[%s1302_s20 + $0x18] sm:$0xff]  ;;  %v300_v7 = vmul.f32 64.0, %v1325_v4  ;;  %v1337_v10 = vld [vmem:[%s1309_s11] sm:$0xff] }
  0x53   : > { %v1316_v0 = vld [vmem:[%s251_s7] sm:$0xff]  ;;  %v1318_v1 = vld [vmem:[%s251_s7 + $0x8] sm:$0xff]  ;;  %v304_v8 = vmul.f32 448.0, %v1328_v5  ;;  %v307_v9 = vmul.f32 448.0, %v1331_v6  ;;  %v1343_v12 = vld [vmem:[%s1309_s11 + $0x10] sm:$0xff]  ;;  %v309_v14 = vmul.f32 64.0, %v1337_v10 }
  0x54   : > { %v1340_v11 = vld [vmem:[%s1309_s11 + $0x8] sm:$0xff]  ;;  %v297_v13 = vadd.f32 %v296_v3, %v1316_v0  ;;  %v317_v16 = vmul.f32 448.0, %v1343_v12  ;;  %v1350_v17 = vld [vmem:[%s1309_s11 + $0x18] sm:$0xff]  ;;  %v301_v18 = vadd.f32 %v1318_v1, %v300_v7  ;;  %v1361_v42 = vld [vmem:[%s1302_s20 + $0x30] sm:$0xff]  ;;  %s866_s24 = sshll.u32 %s1120_s15, 7  ;;  %s283_s9 = scalar_lea.vmem [#allocation8], %s806_s18 }
  0x55   : > { %v313_v15 = vmul.f32 64.0, %v1340_v11  ;;  %v320_v19 = vmul.f32 448.0, %v1350_v17  ;;  %v321_v20 = vmul.f32 0.5, %v304_v8  ;;  %v325_v21 = vmul.f32 0.5, %v307_v9  ;;  %v1355_v22 = vld [vmem:[%s1302_s20 + $0x28] sm:$0xff]  ;;  %v1364_v43 = vld [vmem:[%s1302_s20 + $0x38] sm:$0xff]  ;;  %s670_s19 = scalar_lea.hbm %s1558_s3, %s866_s24 }
  0x56   : > { %v310_v23 = vadd.f32 %v309_v14, %v1316_v0  ;;  %v335_v25 = vmul.f32 0.5, %v317_v16  ;;  %v370_v33 = vmul.f32 64.0, %v1355_v22  ;;  %v1367_v52 = vld [vmem:[%s1302_s20 + $0x40] sm:$0xff]  ;;  %v374_v53 = vmul.f32 64.0, %v1361_v42  ;;  %v818_v55 = vld [vmem:[%s1309_s11 + $0x28] sm:$0xff]  ;;  %v819_v60 = vld [vmem:[%s1309_s11 + $0x30] sm:$0xff] }
  0x57   : > { %v314_v24 = vadd.f32 %v1318_v1, %v313_v15  ;;  %v322_v26 = vsub.f32 %v297_v13, %v321_v20  ;;  %v326_v27 = vsub.f32 %v301_v18, %v325_v21  ;;  %v329_v28 = vadd.f32 %v321_v20, %v297_v13  ;;  %v820_v61 = vld [vmem:[%s1309_s11 + $0x38] sm:$0xff]  ;;  %v821_v62 = vld [vmem:[%s1309_s11 + $0x40] sm:$0xff]  ;;  %s672_s22 = sshll.u32 %s283_s9, 4  ;;  %s659_s21 = scalar_lea.sflag [#allocation4], %s1298_s1  ;;  %s673_s22 = int_to_ptr.vmem [resolvable:$true] %s672_s22 }
  0x58   : > { %v332_v29 = vadd.f32 %v325_v21, %v301_v18  ;;  %v336_v30 = vsub.f32 %v310_v23, %v335_v25  ;;  %v339_v31 = vmul.f32 0.5, %v320_v19  ;;  %v343_v32 = vadd.f32 %v335_v25, %v310_v23  ;;  %s1044_s23 = scalar_lea.vmem %s673_s22, 128  ;;  %s1136_s8 = smov [#allocation8]  }
  0x59   : > { %v323_v34 = vmax.f32 %v322_v26, 0.0  ;;  %v327_v35 = vmax.f32 %v326_v27, 0.0  ;;  %v330_v36 = vmax.f32 %v329_v28, 0.0  ;;  %v378_v54 = vmul.f32 448.0, %v1364_v43  ;;  %p1045_p8 = scmp.ne.s32.totalorder %s673_s22, %s1044_s23  ;;  %s1048_s10 = sshll.u32 %s1136_s8, 4  ;;  %s1049_s10 = int_to_ptr.vmem [resolvable:$false] %s1048_s10 }
  0x5a   : > { %v333_v37 = vmax.f32 %v332_v29, 0.0  ;;  %v337_v38 = vmax.f32 %v336_v30, 0.0  ;;  %v340_v39 = vsub.f32 %v314_v24, %v339_v31  ;;  %v344_v40 = vmax.f32 %v343_v32, 0.0  ;;  %s1050_s15 = scalar_lea.vmem %s1049_s10, 256  ;;  %p1051_p4 = scmp.lt.s32.totalorder %s673_s22, %s1049_s10 }
  0x5b   : > { %v346_v41 = vadd.f32 %v339_v31, %v314_v24  ;;  %v324_v44 = vmin.f32 %v323_v34, 448.0  ;;  %v328_v45 = vmin.f32 %v327_v35, 448.0  ;;  %v331_v46 = vmin.f32 %v330_v36, 448.0  ;;  %p1046_p0 = pnand %p1045_p8, %p1212_p9  ;;  %p1052_p5 = scmp.lt.s32.totalorder %s1050_s15, %s1044_s23 }
  0x5c   : > { %v334_v47 = vmin.f32 %v333_v37, 448.0  ;;  %v338_v48 = vmin.f32 %v337_v38, 448.0  ;;  %v341_v49 = vmax.f32 %v340_v39, 0.0  ;;  %v345_v50 = vmin.f32 %v344_v40, 448.0 }
  0x5d   : > { %v347_v51 = vmax.f32 %v346_v41, 0.0  ;;  %v371_v63 = vadd.f32 %v370_v33, %v1316_v0  ;;  %v381_v3 = vmul.f32 448.0, %v1367_v52  ;;  %v358_v9 = vsub.f32 %v331_v46, %v324_v44  ;;  %p1047_p2 = pneg %p1046_p0  ;;  %p1053_p6 = por %p1052_p5, %p1051_p4 }
  0x5e   : > { %v342_v56 = vmin.f32 %v341_v49, 448.0  ;;  %v349_v58 = vmin.f32 %v331_v46, %v345_v50  ;;  %v350_v59 = vmax.f32 %v324_v44, %v338_v48  ;;  %v375_v13 = vadd.f32 %v1318_v1, %v374_v53 }
  0x5f   : > { %v348_v57 = vmin.f32 %v347_v51, 448.0  ;;  %v384_v14 = vmul.f32 64.0, %v818_v55  ;;  %v388_v15 = vmul.f32 64.0, %v819_v60  ;;  %v392_v16 = vmul.f32 448.0, %v820_v61  ;;  %p1054_p7 = pnand %p1053_p6, %p1047_p2 }
  0x60   : > { %v354_v8 = vmax.f32 %v328_v45, %v342_v56  ;;  %v395_v18 = vmul.f32 448.0, %v821_v62  ;;  %v351_v19 = vsub.f32 %v349_v58, %v350_v59  ;;  %v359_v20 = vsub.f32 %v334_v47, %v328_v45 }
  0x61   : > { %v353_v7 = vmin.f32 %v334_v47, %v348_v57  ;;  %v361_v21 = vsub.f32 %v345_v50, %v338_v48  ;;  %v396_v23 = vmul.f32 0.5, %v378_v54  ;;  %v385_v24 = vadd.f32 %v384_v14, %v1316_v0  ;;  %v829_v14 = vld [vmem:[%s1302_s20 + $0x60] sm:$0xff] }
  0x62   : > { %v389_v25 = vadd.f32 %v1318_v1, %v388_v15  ;;  %v400_v26 = vmul.f32 0.5, %v381_v3  ;;  %v410_v27 = vmul.f32 0.5, %v392_v16  ;;  %v362_v29 = vsub.f32 %v348_v57, %v342_v56  ;;  %v826_v3 = vld [vmem:[%s1309_s11 + $0x50] sm:$0xff] }
  0x63   : > { %v355_v28 = vsub.f32 %v353_v7, %v354_v8  ;;  %v397_v30 = vsub.f32 %v371_v63, %v396_v23  ;;  %v404_v31 = vadd.f32 %v396_v23, %v371_v63  ;;  %v414_v35 = vmul.f32 0.5, %v395_v18  ;;  %v825_v63 = vld [vmem:[%s1302_s20 + $0x50] sm:$0xff]  ;;  %v832_v23 = vld [vmem:[%s1309_s11 + $0x68] sm:$0xff] }
  0x64   : > { %v401_v32 = vsub.f32 %v375_v13, %v400_v26  ;;  %v407_v33 = vadd.f32 %v400_v26, %v375_v13  ;;  %v411_v34 = vsub.f32 %v385_v24, %v410_v27  ;;  %v360_v36 = vmul.f32 %v359_v20, %v358_v9  ;;  %v827_v9 = vld [vmem:[%s1302_s20 + $0x58] sm:$0xff]  ;;  %v830_v20 = vld [vmem:[%s1309_s11 + $0x60] sm:$0xff] }
  0x65   : > { %v398_v37 = vmax.f32 %v397_v30, 0.0  ;;  %v405_v38 = vmax.f32 %v404_v31, 0.0  ;;  %v418_v39 = vadd.f32 %v410_v27, %v385_v24  ;;  %v415_v0 = vsub.f32 %v389_v25, %v414_v35  ;;  %v828_v13 = vld [vmem:[%s1309_s11 + $0x58] sm:$0xff]  ;;  %v833_v27 = vld [vmem:[%s1302_s20 + $0x70] sm:$0xff] }
  0x66   : > { %v402_v40 = vmax.f32 %v401_v32, 0.0  ;;  %v408_v41 = vmax.f32 %v407_v33, 0.0  ;;  %v412_v44 = vmax.f32 %v411_v34, 0.0  ;;  %v352_v45 = vmax.f32 %v351_v19, 1e-06 }
  0x67   : > { %v399_v1 = vmin.f32 %v398_v37, 448.0  ;;  %v406_v46 = vmin.f32 %v405_v38, 448.0  ;;  %v419_v47 = vmax.f32 %v418_v39, 0.0  ;;  %v356_v48 = vmax.f32 %v355_v28, 1e-06  ;;  %v834_v28 = vld [vmem:[%s1309_s11 + $0x70] sm:$0xff] }
  0x68   : > { %v363_v49 = vmul.f32 %v362_v29, %v361_v21  ;;  %v413_v50 = vmin.f32 %v412_v44, 448.0  ;;  %v416_v51 = vmax.f32 %v415_v0, 0.0  ;;  %v403_v53 = vmin.f32 %v402_v40, 448.0  ;;  %v831_v21 = vld [vmem:[%s1302_s20 + $0x68] sm:$0xff]  ;;  %v835_v37 = vld [vmem:[%s1302_s20 + $0x78] sm:$0xff] }
  0x69   : > { %v409_v54 = vmin.f32 %v408_v41, 448.0  ;;  %v420_v55 = vmin.f32 %v419_v47, 448.0  ;;  %v421_v56 = vadd.f32 %v414_v35, %v389_v25  ;;  %v433_v61 = vsub.f32 %v406_v46, %v399_v1  ;;  %v836_v38 = vld [vmem:[%s1309_s11 + $0x78] sm:$0xff] }
  0x6a   : > { %v417_v57 = vmin.f32 %v416_v51, 448.0  ;;  %v425_v58 = vmax.f32 %v399_v1, %v413_v50  ;;  %v1382_v7 = vmul.f32 %v356_v48, %v352_v45  ;;  %v364_v8 = vadd.f32 %v363_v49, %v360_v36  ;;  %v837_v1 = vld [vmem:[%s1302_s20 + $0x80] sm:$0xff]  ;;  %v839_v51 = vld [vmem:[%s1302_s20 + $0x88] sm:$0xff] }
  0x6b   : > { %v422_v59 = vmax.f32 %v421_v56, 0.0  ;;  %v424_v60 = vmin.f32 %v406_v46, %v420_v55  ;;  %v434_v62 = vsub.f32 %v409_v54, %v403_v53  ;;  %v436_v19 = vsub.f32 %v420_v55, %v413_v50  ;;  %v838_v46 = vld [vmem:[%s1309_s11 + $0x80] sm:$0xff] }
  0x6c   : > { %v429_v18 = vmax.f32 %v403_v53, %v417_v57  ;;  %v471_v29 = vsub.f32 %v825_v63, %v826_v3  ;;  %v477_v30 = vsub.f32 %v827_v9, %v828_v13  ;;  %v484_v31 = vsub.f32 %v829_v14, %v830_v20  ;;  %v840_v53 = vld [vmem:[%s1309_s11 + $0x88] sm:$0xff]  ;;  %v843_v63 = vld [vmem:[%s1302_s20 + $0x98] sm:$0xff] }
  0x6d   : > { %v423_v15 = vmin.f32 %v422_v59, 448.0  ;;  %v426_v16 = vsub.f32 %v424_v60, %v425_v58  ;;  %v435_v25 = vmul.f32 %v434_v62, %v433_v61  ;;  %v491_v32 = vsub.f32 %v831_v21, %v832_v23  ;;  %v841_v58 = vld [vmem:[%s1302_s20 + $0x90] sm:$0xff]  ;;  %v844_v3 = vld [vmem:[%s1309_s11 + $0x98] sm:$0xff]  ;;  %v847_v21 = vld [vmem:[%s1302_s20 + $0xa8] sm:$0xff] }
  0x6e   : > { %v365_v33 = vsub.f32 %v364_v8, %v1382_v7  ;;  %v472_v39 = vmul.f32 %v471_v29, %v471_v29  ;;  %v478_v40 = vmul.f32 %v477_v30, %v477_v30  ;;  %v485_v41 = vmul.f32 %v484_v31, %v484_v31  ;;  %v842_v59 = vld [vmem:[%s1309_s11 + $0x90] sm:$0xff]  ;;  %v1404_v8 = vld [vmem:[%s1309_s11 + $0x20] sm:$0xff]  ;;  %v848_v23 = vld [vmem:[%s1309_s11 + $0xa8] sm:$0xff] }
  0x6f   : > { %v428_v24 = vmin.f32 %v409_v54, %v423_v15  ;;  %v437_v26 = vsub.f32 %v423_v15, %v417_v57  ;;  %v427_v34 = vmax.f32 %v426_v16, 1e-06  ;;  %v498_v44 = vsub.f32 %v833_v27, %v834_v28  ;;  %v845_v15 = vld [vmem:[%s1302_s20 + $0xa0] sm:$0xff]  ;;  %v849_v31 = vld [vmem:[%s1302_s20 + $0xb0] sm:$0xff] }
  0x70   : > { %v479_v47 = vadd.f32 %v478_v40, %v472_v39  ;;  %v492_v48 = vmul.f32 %v491_v32, %v491_v32  ;;  %v505_v49 = vsub.f32 %v835_v37, %v836_v38  ;;  %948 = vrcp.f32 %v365_v33  ;;  %v846_v16 = vld [vmem:[%s1309_s11 + $0xa0] sm:$0xff]  ;;  %v850_v32 = vld [vmem:[%s1309_s11 + $0xb0] sm:$0xff]  ;;  %v852_v39 = vld [vmem:[%s1309_s11 + $0xb8] sm:$0xff] }
  0x71   : > { %v430_v35 = vsub.f32 %v428_v24, %v429_v18  ;;  %v438_v36 = vmul.f32 %v437_v26, %v436_v19  ;;  %v499_v55 = vmul.f32 %v498_v44, %v498_v44  ;;  %v512_v56 = vsub.f32 %v837_v1, %v838_v46 }
  0x72   : > { %v486_v54 = vadd.f32 %v485_v41, %v479_v47  ;;  %v506_v61 = vmul.f32 %v505_v49, %v505_v49  ;;  %v519_v62 = vsub.f32 %v839_v51, %v840_v53  ;;  %v526_v14 = vsub.f32 %v841_v58, %v842_v59  ;;  %v856_v58 = vld [vmem:[%s1309_s11 + $0xc8] sm:$0xff] }
  0x73   : > { %v431_v0 = vmax.f32 %v430_v35, 1e-06  ;;  %v439_v45 = vadd.f32 %v438_v36, %v435_v25  ;;  %v513_v13 = vmul.f32 %v512_v56, %v512_v56  ;;  %v533_v20 = vsub.f32 %v843_v63, %v844_v3  ;;  %v857_v3 = vld [vmem:[%s1302_s20 + $0xd0] sm:$0xff] }
  0x74   : > { %v493_v60 = vadd.f32 %v492_v48, %v486_v54  ;;  %v520_v19 = vmul.f32 %v519_v62, %v519_v62  ;;  %vm447_vm0 = vcmp.gt.f32.partialorder %v1404_v8, 0.0  ;;  %v527_v25 = vmul.f32 %v526_v14, %v526_v14  ;;  %v854_v48 = vld [vmem:[%s1309_s11 + $0xc0] sm:$0xff]  ;;  %v860_v14 = vld [vmem:[%s1309_s11 + $0xd8] sm:$0xff] }
  0x75   : > { %v432_v50 = vmul.f32 %v431_v0, %v427_v34  ;;  %v540_v26 = vsub.f32 %v845_v15, %v846_v16  ;;  %v1414_v27 = vsel %vm447_vm0, %v1343_v12, 1.0  ;;  %v534_v29 = vmul.f32 %v533_v20, %v533_v20  ;;  %v851_v12 = vld [vmem:[%s1302_s20 + $0xb8] sm:$0xff] }
  0x76   : > { %v500_v9 = vadd.f32 %v499_v55, %v493_v60  ;;  %v547_v30 = vsub.f32 %v847_v21, %v848_v23  ;;  %v1421_v33 = vsel %vm447_vm0, %v1350_v17, 1.0  ;;  %v448_v35 = vmax.f32 %v1328_v5, 1e-06 }
  0x77   : > { %v440_v57 = vsub.f32 %v439_v45, %v432_v50  ;;  %v452_v36 = vmax.f32 %v1364_v43, 1e-06  ;;  %v541_v38 = vmul.f32 %v540_v26, %v540_v26  ;;  %v450_v40 = vmax.f32 %v1331_v6, 1e-06  ;;  %v853_v6 = vld [vmem:[%s1302_s20 + $0xc0] sm:$0xff] }
  0x78   : > { %v507_v18 = vadd.f32 %v506_v61, %v500_v9  ;;  %v454_v41 = vmax.f32 %v1367_v52, 1e-06  ;;  %v554_v44 = vsub.f32 %v849_v31, %v850_v32  ;;  %v548_v0 = vmul.f32 %v547_v30, %v547_v30  ;;  %v858_v9 = vld [vmem:[%s1309_s11 + $0xd0] sm:$0xff]  ;;  %v862_v26 = vld [vmem:[%s1309_s11 + $0xe0] sm:$0xff] }
  0x79   : > { %950 = vrcp.f32 %v440_v57  ;;  %v561_v43 = vsub.f32 %v851_v12, %v852_v39  ;;  %v449_v1 = vmin.f32 %v448_v35, 1000000.0  ;;  %v453_v46 = vmin.f32 %v452_v36, 1000000.0  ;;  %v855_v57 = vld [vmem:[%s1302_s20 + $0xc8] sm:$0xff]  ;;  %v824_v39 = vld [vmem:[%s1302_s20 + $0x20] sm:$0xff] }
  0x7a   : > { %v514_v24 = vadd.f32 %v513_v13, %v507_v18  ;;  %952 = vrsqrt.f32 %v1414_v27  ;;  %v451_v49 = vmin.f32 %v450_v40, 1000000.0  ;;  %v455_v51 = vmin.f32 %v454_v41, 1000000.0  ;;  %v859_v13 = vld [vmem:[%s1302_s20 + $0xd8] sm:$0xff]  ;;  %v864_v35 = vld [vmem:[%s1309_s11 + $0xe8] sm:$0xff] }
  0x7b   : > { %954 = vrsqrt.f32 %v1421_v33  ;;  %v555_v53 = vmul.f32 %v554_v44, %v554_v44  ;;  %v562_v55 = vmul.f32 %v561_v43, %v561_v43  ;;  %v568_v56 = vsub.f32 %v853_v6, %v854_v48  ;;  %v823_v12 = vld [vmem:[%s1302_s20 + $0x48] sm:$0xff] }
  0x7c   : > { %v521_v28 = vadd.f32 %v520_v19, %v514_v24  ;;  %v575_v63 = vsub.f32 %v855_v57, %v856_v58  ;;  %v582_v16 = vsub.f32 %v857_v3, %v858_v9  ;;  %v589_v24 = vsub.f32 %v859_v13, %v860_v14 }
  0x7d   : > { %v949_v34 = vpop.eup %948  ;;  %v569_v62 = vmul.f32 %v568_v56, %v568_v56  ;;  %vm615_vm2 = vcmp.eq.f32.partialorder %v1414_v27, inf  ;;  %vm630_vm3 = vcmp.eq.f32.partialorder %v1421_v33, inf  ;;  %v618_v32 = vand.u32 2147483648, %v1414_v27 }
  0x7e   : > { %v528_v37 = vadd.f32 %v527_v25, %v521_v28  ;;  %v1432_v5 = vmul.f32 %v949_v34, %v1382_v7  ;;  %v576_v20 = vmul.f32 %v575_v63, %v575_v63  ;;  %v861_v25 = vld [vmem:[%s1302_s20 + $0xe0] sm:$0xff]  ;;  %v863_v34 = vld [vmem:[%s1302_s20 + $0xe8] sm:$0xff]  ;;  %vm617_vm4 = vcmp.eq.f32.partialorder %v1414_v27, 0.0 }
  0x7f   : > { %vm632_vm5 = vcmp.eq.f32.partialorder %v1421_v33, 0.0  ;;  %v603_v43 = vsub.f32 %v863_v34, %v864_v35  ;;  %v650_v58 = vmul.f32 %v824_v39, %v824_v39 }
  0x80   : > { %v535_v17 = vadd.f32 %v534_v29, %v528_v37  ;;  %v583_v29 = vmul.f32 %v582_v16, %v582_v16  ;;  %v633_v37 = vand.u32 2147483648, %v1421_v33 }
  0x82   : > { %v542_v47 = vadd.f32 %v541_v38, %v535_v17 }
  0x84   : > { %v549_v54 = vadd.f32 %v548_v0, %v542_v47 }
  0x86   : > { %v951_v45 = vpop.eup %950  ;;  %v556_v60 = vadd.f32 %v555_v53, %v549_v54 }
  0x87   : > { %v1436_v52 = vmul.f32 %v951_v45, %v432_v50  ;;  %v953_v15 = vpop.eup %952 }
  0x88   : > { %v563_v61 = vadd.f32 %v562_v55, %v556_v60  ;;  %v955_v18 = vpop.eup %954  ;;  %v614_v28 = vmul.f32 %v953_v15, %v1414_v27 }
  0x89   : > { %vm1440_vm1 = vcmp.lt.f32.partialorder %v1432_v5, %v1436_v52  ;;  %v629_v30 = vmul.f32 %v955_v18, %v1421_v33 }
  0x8a   : > { %v1446_v50 = vsel %vm1440_vm1, %v453_v46, %v449_v1  ;;  %v1452_v59 = vsel %vm1440_vm1, %v455_v51, %v451_v49  ;;  %v570_v19 = vadd.f32 %v569_v62, %v563_v61  ;;  %v456_v21 = vsel %vm1440_vm1, %v1355_v22, %v1321_v2 }
  0x8b   : > { %956 = vrsqrt.f32 %v1446_v50  ;;  %v457_v23 = vsel %vm1440_vm1, %v1361_v42, %v1325_v4  ;;  %v636_v2 = vsub.f32 %v456_v21, %v1337_v10  ;;  %v590_v4 = vmul.f32 %v589_v24, %v589_v24 }
  0x8c   : > { %958 = vrsqrt.f32 %v1452_v59  ;;  %v577_v31 = vadd.f32 %v576_v20, %v570_v19  ;;  %v638_v22 = vsub.f32 %v457_v23, %v1340_v11  ;;  %v596_v42 = vsub.f32 %v861_v25, %v862_v26 }
  0x8d   : > { %v616_v36 = vsel %vm615_vm2, %v1414_v27, %v614_v28  ;;  %vm608_vm6 = vcmp.eq.f32.partialorder %v1446_v50, inf  ;;  %vm610_vm7 = vcmp.eq.f32.partialorder %v1446_v50, 0.0  ;;  %v611_v10 = vand.u32 2147483648, %v1446_v50 }
  0x8e   : > { %v631_v11 = vsel %vm630_vm3, %v1421_v33, %v629_v30  ;;  %v584_v40 = vadd.f32 %v583_v29, %v577_v31  ;;  %v637_v44 = vmul.f32 %v636_v2, %v636_v2  ;;  %v639_v17 = vmul.f32 %v638_v22, %v638_v22 }
  0x8f   : > { %v619_v45 = vsel %vm617_vm4, %v618_v32, %v616_v36  ;;  %vm623_vm8 = vcmp.eq.f32.partialorder %v1452_v59, inf  ;;  %v626_v1 = vand.u32 2147483648, %v1452_v59  ;;  %v597_v46 = vmul.f32 %v596_v42, %v596_v42 }
  0x90   : > { %vm625_vm9 = vcmp.eq.f32.partialorder %v1452_v59, 0.0  ;;  %v444_v48 = vsel %vm1440_vm1, %v1436_v52, %v1432_v5  ;;  %v464_v27 = vsel %vm1440_vm1, %v823_v12, %v824_v39  ;;  %v634_v51 = vsel %vm632_vm5, %v633_v37, %v631_v11 }
  0x91   : > { %v591_v53 = vadd.f32 %v590_v4, %v584_v40  ;;  %v640_v56 = vadd.f32 %v639_v17, %v637_v44  ;;  %v646_v5 = vsub.f32 %v464_v27, %v444_v48  ;;  %v651_v52 = vmul.f32 %v823_v12, %v823_v12 }
  0x92   : > { %v604_v62 = vmul.f32 %v603_v43, %v603_v43 }
  0x93   : > { %v598_v7 = vadd.f32 %v597_v46, %v591_v53  ;;  %v647_v3 = vmul.f32 %v646_v5, %v646_v5  ;;  %v652_v9 = vadd.f32 %v651_v52, %v650_v58 }
  0x95   : > { %v605_v13 = vadd.f32 %v604_v62, %v598_v7  ;;  %v653_v15 = vmul.f32 0.5, %v652_v9 }
  0x98   : > { %v957_v38 = vpop.eup %956 }
  0x99   : > { %v607_v41 = vmul.f32 %v957_v38, %v1446_v50  ;;  %v959_v0 = vpop.eup %958 }
  0x9a   : > { %v622_v6 = vmul.f32 %v959_v0, %v1452_v59 }
  0x9b   : > { %v609_v47 = vsel %vm608_vm6, %v1446_v50, %v607_v41 }
  0x9c   : > { %v612_v49 = vsel %vm610_vm7, %v611_v10, %v609_v47  ;;  %v624_v55 = vsel %vm623_vm8, %v1452_v59, %v622_v6 }
  0x9d   : > { %v620_v54 = vsub.f32 %v612_v49, %v619_v45  ;;  %v627_v57 = vsel %vm625_vm9, %v626_v1, %v624_v55 }
  0x9e   : > { %v635_v60 = vsub.f32 %v627_v57, %v634_v51 }
  0x9f   : > { %v641_v61 = vmul.f32 %v620_v54, %v620_v54 }
  0xa0   : > { %v643_v63 = vmul.f32 %v635_v60, %v635_v60 }
  0xa1   : > { %v642_v50 = vadd.f32 %v641_v61, %v640_v56 }
  0xa3   : > { %v644_v33 = vadd.f32 %v643_v63, %v642_v50 }
  0xa5   : > { %v645_v59 = vmul.f32 5.0, %v644_v33 }
  0xa7   : > { %v648_v14 = vadd.f32 %v647_v3, %v645_v59 }
  0xa9   : > { %v649_v16 = vadd.f32 %v648_v14, %v605_v13 }
  0xab   : > { %v654_v18 = vsel %vm447_vm0, %v649_v16, %v653_v15 }
  0xac   : > { %657 = vst [vmem:[%s283_s9] sm:$0xff] %v654_v18 }
  0xad   : > { %1057 = shalt.err (!%p1054_p7)
}
  0xae   : > { %s1058_s26 = scalar_lea.hbm %s670_s19, 128  ;;  %s1062_s0 = scalar_lea.hbm %s1558_s3, 256 }
  0xaf   : > { %p1059_p1 = scmp.ne.s32.totalorder %s670_s19, %s1058_s26  ;;  %p1063_p3 = scmp.lt.s32.totalorder %s670_s19, %s1558_s3 }
  0xb0   : > { %p1064_p8 = scmp.lt.s32.totalorder %s1062_s0, %s1058_s26 }
  0xb1   : > { %p1060_p10 = pnand %p1059_p1, %p1212_p9 }
  0xb2   : > { %p1065_p0 = por %p1064_p8, %p1063_p3 }
  0xb3   : > { %p1061_p13 = pneg %p1060_p10 }
  0xb5   : > { %p1066_p12 = pnand %p1065_p0, %p1061_p13 }
  0xb7   : > { %1069 = shalt.err (!%p1066_p12)
}
  0xb8   : > { %878 = dma.vmem_to_hbm [thread:$0]  (%p1212_p9), %s673_s22, 128, %s670_s19, %s659_s21  }
  0xb9 PF: > { %s684_s30 = sand.u32 1, %s1108_s12   ;;  %p1579_p2 = scmp.ge.s32.totalorder %s1128_s17, 2 }
  0xba   : > { %s685_s4 = scalar_lea.sflag [#allocation4], %s684_s30 }
  0xbb   : > { %p891_p4 = pnand %p1579_p2, %p1219_p11 }
  0xbd   : > { %p892_p5 = pneg %p891_p4 }
  0xbf   : > { %1103 = dma.done.wait (%p892_p5), %s685_s4, 128  }
  0xc0   : > { %1105 = vsyncadd (%p892_p5), %s685_s4, 4294967168  ;;  %s22_s17 = sadd.s32 1, %s1128_s17   ;;  %s1580_s11 = sld [smem:[#allocation14_spill]] }
  0xc1   : > { %p19_p6 = scmp.ge.s32.totalorder %s22_s17, 4   ;;  %s1581_s15 = sld [smem:[#allocation12_spill]] }
  0xc2   : > { %s1582_s16 = sld [smem:[#allocation13_spill]]  ;;  %s1583_s12 = smov %s1112_s13 }
  0xc3   : > { %s1584_s13 = smov %s1116_s14  ;;  %21 = sbr.rel (!%p19_p6) target bundleno = 11 (0xb), region = 163 }
  0xc6   : > { %s1585_s14 = smov %s1580_s11 }
  0xc8   :  { %690 = vsyncpa [#allocation3], 1 }
  0xc9   :  { %692 = vsyncpa [#allocation3 + $0x1], 1 }
  0xca   :  { %693 = vsyncpa [#allocation6], 1 }
  0xcb   :  { %695 = vsyncpa [#allocation6 + $0x1], 1 }
  0xcc   :  { %696 = vsyncpa [#allocation4], 1 }
  0xcd   :  { %698 = vsyncpa [#allocation4 + $0x1], 1 }

</bundles_post_ra>
